<compile_context>
chip_gen: v6e
topology: v6e:2x2x1
jax: 0.10.0
libtpu: 0.0.40
codegen_flags: <defaults>
</compile_context>

<pallas_src>
import functools

import numpy as np

import jax
import jax.numpy as jnp
from jax.experimental import pallas as pl
from jax.experimental.pallas import tpu as pltpu

LANE = 128
H_PAD = 128                      # padded hidden width (real hidden dims: 16/32)


def _round_up(v, m):
    return ((v + m - 1) // m) * m


def _weight_slab_layout(f_pad):
    # (name, rows); every block is [rows, 128] bf16, concatenated along rows.
    return [
        ("e1w1a", f_pad), ("e1w1b", f_pad), ("e1w2", H_PAD),
        ("e2w1a", H_PAD), ("e2w1b", H_PAD), ("e2w2", H_PAD),
        ("e3w1a", H_PAD), ("e3w1b", H_PAD), ("e3w2", H_PAD),
        ("l1w", H_PAD), ("l2w", H_PAD),
    ]


BIAS_ORDER = ("e1b1", "e1b2", "e2b1", "e2b2", "e3b1", "e3b2", "l1b", "l2b")


# ---------------------------------------------------------------------------
# Fused kernel factory: one grid step == G graphs.
# ---------------------------------------------------------------------------
def make_fused_kernel(G, ng, max_deg, f_pad, num_classes):
    ep = max_deg * ng
    layout = _weight_slab_layout(f_pad)
    w_off, o = {}, 0
    for name, rows in layout:
        w_off[name] = (o, rows)
        o += rows
    b_off = {name: i for i, name in enumerate(BIAS_ORDER)}

    def kernel(cnt_ref, x_ref, ad_ref, ev_ref, w_ref, b_ref, out_ref):
        f32, bf16 = jnp.float32, jnp.bfloat16

        def w(name):
            off, rows = w_off[name]
            return w_ref[off:off + rows, :]            # [rows, 128] bf16, static

        def b(name):
            k = b_off[name]
            return b_ref[k:k + 1, :]                   # [1, 128] f32, static

        ad = ad_ref[...]                               # [G, Ep, Ng] bf16 (0/+-1)
        evf = ev_ref[...].astype(f32)                  # [G, Ep, 1]   edge mask

        def edge_conv(xin, w1a, w1b, b1, w2, b2):
            # xin: [G, Ng, Fin] f32.
            # First Linear is applied per NODE (u = x@w1a for the x_i term,
            # v = x@w1b for the (x_j - x_i) basis); the per-edge difference is
            # gathered afterwards:  (a_d @ x) @ w1b == a_d @ (x @ w1b).
            gn, fin = xin.shape[0] * xin.shape[1], xin.shape[2]
            xf = xin.reshape(gn, fin).astype(bf16)              # [G*Ng, Fin]
            u = jnp.dot(xf, w1a, preferred_element_type=f32)    # [G*Ng, H]
            v = jnp.dot(xf, w1b, preferred_element_type=f32)    # [G*Ng, H]
            v3 = v.reshape(G, ng, H_PAD).astype(bf16)
            # Per-edge-slot (x_j - x_i) @ w1b via the 0/+-1 selector (bf16 exact).
            d3 = jnp.einsum("gen,gnh->geh", ad, v3,
                            preferred_element_type=f32)         # [G, Ep, H]
            # Target node is on the slot diagonal -> broadcast u over slots.
            u4 = u.reshape(G, 1, ng, H_PAD)
            h4 = jnp.maximum(d3.reshape(G, max_deg, ng, H_PAD) + u4 + b1, 0.0)
            h2 = h4.reshape(G * ep, H_PAD).astype(bf16)
            msg = jnp.dot(h2, w2, preferred_element_type=f32)   # big-M matmul
            msg = jnp.maximum(msg + b2, 0.0)                    # [G*Ep, H] >= 0
            # Mask padded edge slots once; since msg >= 0, "*0" matches the
            # PyG scatter-max fill of 0 for isolated nodes.
            msg3 = msg.reshape(G, ep, H_PAD) * evf              # [G, Ep, H]
            agg = msg3[:, 0:ng, :]
            for d in range(1, max_deg):                         # hoisted-mask loop
                agg = jnp.maximum(agg, msg3[:, d * ng:(d + 1) * ng, :])
            return agg                                          # [G, Ng, H]

        x0 = x_ref[...]                                         # [G, Ng, F] f32
        x1 = edge_conv(x0, w("e1w1a"), w("e1w1b"), b("e1b1"), w("e1w2"), b("e1b2"))
        x2 = edge_conv(x1, w("e2w1a"), w("e2w1b"), b("e2b1"), w("e2w2"), b("e2b2"))
        x3 = edge_conv(x2, w("e3w1a"), w("e3w1b"), b("e3b1"), w("e3w2"), b("e3b2"))

        # global_mean_pool: exact division by the true node count (from SMEM),
        # guarded against empty / padded graphs.
        g0 = pl.program_id(0) * G
        gid = jax.lax.broadcasted_iota(jnp.int32, (G, 1), 0)
        cnt_vec = jnp.zeros((G, 1), jnp.int32)
        for i in range(G):
            cnt_vec = jnp.where(gid == i, cnt_ref[g0 + i], cnt_vec)
        cnt_f = jnp.maximum(cnt_vec.astype(f32), 1.0)
        pooled = jnp.sum(x3, axis=1) / cnt_f                    # [G, H]

        h = jnp.dot(pooled.astype(bf16), w("l1w"), preferred_element_type=f32)
        h = jnp.maximum(h + b("l1b"), 0.0)
        # TODO(synk): F.dropout(p=0.2) omitted (eval-mode identity); training
        # parity would use pltpu.prng_seed / prng_random_bits here.
        z = jnp.dot(h.astype(bf16), w("l2w"), preferred_element_type=f32)
        z = jnp.maximum(z + b("l2b"), 0.0)                      # [G, C_pad]

        # log_softmax over the real classes only (padded lanes -> -inf-ish).
        lane = jax.lax.broadcasted_iota(jnp.int32, z.shape, 1)
        z = jnp.where(lane < num_classes, z, -1e30)
        zmax = jnp.max(z, axis=-1, keepdims=True)
        lse = zmax + jnp.log(jnp.sum(jnp.exp(z - zmax), axis=-1, keepdims=True))
        out_ref[0] = z - lse

    return kernel


# ---------------------------------------------------------------------------
# Wrapper: pack weights into slabs, scatter nodes per graph, launch the kernel.
# ---------------------------------------------------------------------------
@functools.partial(jax.jit, static_argnames=("num_classes", "graphs_per_step"))
def net_forward(params, x, a_d, edge_valid, node_cnt, gidx, lidx, *,
                num_classes, graphs_per_step=2):
    eg1, eg2, eg3, lin1, lin2 = params
    num_graphs, ep, ng_pad = a_d.shape
    max_deg = ep // ng_pad
    f = x.shape[1]
    f_pad = _round_up(f, LANE)
    c_pad = _round_up(num_classes, LANE)
    if c_pad != H_PAD:
        raise ValueError("packed weight slab assumes num_classes <= 128")

    G = max(1, min(int(graphs_per_step), int(num_graphs)))
    b_pad = _round_up(num_graphs, G)
    pad_g = b_pad - num_graphs
    num_steps = b_pad // G

    def pad_block(wm, rows):
        blk = jnp.zeros((rows, H_PAD), jnp.float32)
        return blk.at[:wm.shape[0], :wm.shape[1]].set(wm)

    def split_w1(w1):
        half = w1.shape[0] // 2
        return w1[:half], w1[half:]

    e1w1, e1b1, e1w2, e1b2 = eg1
    e2w1, e2b1, e2w2, e2b2 = eg2
    e3w1, e3b1, e3w2, e3b2 = eg3
    e1w1a, e1w1b = split_w1(e1w1)
    e2w1a, e2w1b = split_w1(e2w1)
    e3w1a, e3w1b = split_w1(e3w1)

    wmats = {"e1w1a": e1w1a, "e1w1b": e1w1b, "e1w2": e1w2,
             "e2w1a": e2w1a, "e2w1b": e2w1b, "e2w2": e2w2,
             "e3w1a": e3w1a, "e3w1b": e3w1b, "e3w2": e3w2,
             "l1w": lin1[0], "l2w": lin2[0]}
    bvecs = {"e1b1": e1b1, "e1b2": e1b2, "e2b1": e2b1, "e2b2": e2b2,
             "e3b1": e3b1, "e3b2": e3b2, "l1b": lin1[1], "l2b": lin2[1]}

    layout = _weight_slab_layout(f_pad)
    w_slab = jnp.concatenate([pad_block(wmats[n], r) for n, r in layout],
                             axis=0).astype(jnp.bfloat16)       # [rows, 128]
    b_slab = jnp.concatenate([pad_block(bvecs[n], 1) for n in BIAS_ORDER],
                             axis=0)                            # [8, 128] f32

    # Scatter node features into the per-graph padded layout [B_pad, Ng, F_pad].
    x_padf = jnp.pad(x.astype(jnp.float32), ((0, 0), (0, f_pad - f)))
    xp = jnp.zeros((b_pad, ng_pad, f_pad), jnp.float32).at[gidx, lidx].set(x_padf)

    ad_b = jnp.pad(a_d, ((0, pad_g), (0, 0), (0, 0))).astype(jnp.bfloat16)
    ev_b = jnp.pad(edge_valid, ((0, pad_g), (0, 0), (0, 0))).astype(jnp.bfloat16)
    counts = jnp.pad(node_cnt.reshape(-1).astype(jnp.int32), ((0, pad_g),))

    grid_spec = pltpu.PrefetchScalarGridSpec(
        num_scalar_prefetch=1,                      # node counts -> SMEM
        grid=(num_steps,),
        in_specs=[
            pl.BlockSpec((G, ng_pad, f_pad), lambda s, cnt: (s, 0, 0)),
            pl.BlockSpec((G, ep, ng_pad), lambda s, cnt: (s, 0, 0)),
            pl.BlockSpec((G, ep, 1), lambda s, cnt: (s, 0, 0)),
            pl.BlockSpec(w_slab.shape, lambda s, cnt: (0, 0)),   # resident
            pl.BlockSpec(b_slab.shape, lambda s, cnt: (0, 0)),   # resident
        ],
        out_specs=pl.BlockSpec((1, G, c_pad), lambda s, cnt: (s, 0, 0)),
    )

    out = pl.pallas_call(
        make_fused_kernel(G, ng_pad, max_deg, f_pad, num_classes),
        grid_spec=grid_spec,
        out_shape=jax.ShapeDtypeStruct((num_steps, G, c_pad), jnp.float32),
        compiler_params=pltpu.CompilerParams(
            dimension_semantics=("parallel",),          # megacore across steps
            vmem_limit_bytes=32 * 1024 * 1024),
    )(counts, xp, ad_b, ev_b, w_slab, b_slab)

    return out.reshape(b_pad, c_pad)[:num_graphs, :num_classes]   # [B, C] log-probs


# ---------------------------------------------------------------------------
# Host-side (numpy) padded CSR-like structures for the fused kernel.
# ---------------------------------------------------------------------------
def build_batch_structs(edge_index, batch, num_graphs):
    edge_index = np.asarray(edge_index, dtype=np.int64)
    batch = np.asarray(batch, dtype=np.int64)
    n = batch.shape[0]
    counts = np.bincount(batch, minlength=num_graphs)
    starts = np.zeros(num_graphs, dtype=np.int64)
    starts[1:] = np.cumsum(counts)[:-1]

    ng_pad = max(8, int(_round_up(int(counts.max()), 8)))
    src, dst = edge_index[0], edge_index[1]
    indeg = np.bincount(dst, minlength=n) if src.size else np.zeros(n, np.int64)
    max_deg = max(1, int(indeg.max()))
    ep = max_deg * ng_pad

    # Edge slots laid out slot-major: row = slot * ng_pad + local(target).
    a_d = np.zeros((num_graphs, ep, ng_pad), np.float32)    # onehot(j)-onehot(i)
    edge_valid = np.zeros((num_graphs, ep, 1), np.float32)

    fill = np.zeros(n, dtype=np.int64)
    for e in range(src.shape[0]):
        s, t = int(src[e]), int(dst[e])
        g = int(batch[t])
        ln, ls = t - int(starts[g]), s - int(starts[g])
        r = int(fill[t]) * ng_pad + ln
        fill[t] += 1
        a_d[g, r, ls] += 1.0
        a_d[g, r, ln] -= 1.0
        edge_valid[g, r, 0] = 1.0

    gidx = batch.astype(np.int32)
    lidx = (np.arange(n) - starts[batch]).astype(np.int32)
    return dict(a_d=a_d, edge_valid=edge_valid,
                node_cnt=counts.astype(np.int32), gidx=gidx, lidx=lidx)


# ---------------------------------------------------------------------------
# Parameter init (deterministic, PyTorch Linear-style uniform bounds).
# ---------------------------------------------------------------------------
def linear_params(key, fan_in, fan_out):
    kw, kb = jax.random.split(key)
    bound = 1.0 / np.sqrt(fan_in)
    w = jax.random.uniform(kw, (fan_in, fan_out), jnp.float32, -bound, bound)
    b = jax.random.uniform(kb, (1, fan_out), jnp.float32, -bound, bound)
    return w, b


def init_net_params(key, num_features, num_classes):
    ks = jax.random.split(key, 8)
    eg1 = linear_params(ks[0], 2 * num_features, 32) + linear_params(ks[1], 32, 16)
    eg2 = linear_params(ks[2], 32, 32) + linear_params(ks[3], 32, 16)
    eg3 = linear_params(ks[4], 32, 32) + linear_params(ks[5], 32, 32)
    lin1 = linear_params(ks[6], 32, 16)
    lin2 = linear_params(ks[7], 16, num_classes)
    return eg1, eg2, eg3, lin1, lin2


# ---------------------------------------------------------------------------
# Pure-JAX reference (EdgeConv/max + mean-pool + heads + log_softmax).
# ---------------------------------------------------------------------------
def net_reference(params, x, edge_index, batch, num_graphs):
    eg1, eg2, eg3, lin1, lin2 = params
    src = jnp.asarray(edge_index[0])
    dst = jnp.asarray(edge_index[1])
    batch = jnp.asarray(batch)

    def edge_conv(xv, p):
        w1, b1, w2, b2 = p
        xi, xj = xv[dst], xv[src]
        h = jnp.maximum(jnp.concatenate([xi, xj - xi], axis=-1) @ w1 + b1, 0.0)
        msg = jnp.maximum(h @ w2 + b2, 0.0)
        out = jnp.zeros((xv.shape[0], msg.shape[-1]), msg.dtype)
        return out.at[dst].max(msg)          # max-agg, fill 0 for isolated nodes

    x1 = edge_conv(x, eg1)
    x2 = edge_conv(x1, eg2)
    x3 = edge_conv(x2, eg3)
    sums = jnp.zeros((num_graphs, x3.shape[-1]), x3.dtype).at[batch].add(x3)
    cnt = jnp.zeros((num_graphs,), x3.dtype).at[batch].add(1.0)
    pooled = sums / jnp.maximum(cnt, 1.0)[:, None]
    h = jnp.maximum(pooled @ lin1[0] + lin1[1], 0.0)
    z = jnp.maximum(h @ lin2[0] + lin2[1], 0.0)
    return jax.nn.log_softmax(z, axis=-1)


# ---------------------------------------------------------------------------
if __name__ == "__main__":
    NUM_FEATURES = 8
    NUM_CLASSES = 2
    NODES_PER_GRAPH = 8
    NUM_GRAPHS = 4            # -> grid of 2 steps x 2 graphs (megacore-friendly)
    N = NODES_PER_GRAPH * NUM_GRAPHS

    key = jax.random.PRNGKey(0)
    k_x, k_params = jax.random.split(key)

    # Node features [N, F].
    x = jax.random.normal(k_x, (N, NUM_FEATURES), jnp.float32)

    # Bidirected ring graphs -> every node has in-degree 2.
    src, dst = [], []
    for g in range(NUM_GRAPHS):
        base = g * NODES_PER_GRAPH
        for i in range(NODES_PER_GRAPH):
            a = base + i
            b = base + (i + 1) % NODES_PER_GRAPH
            src += [a, b]
            dst += [b, a]
    edge_index = np.array([src, dst], dtype=np.int32)                # [2, 64]
    batch = np.repeat(np.arange(NUM_GRAPHS), NODES_PER_GRAPH)        # [32]

    params = init_net_params(k_params, NUM_FEATURES, NUM_CLASSES)
    st = build_batch_structs(edge_index, batch, NUM_GRAPHS)

    out = net_forward(
        params, x,
        jnp.asarray(st["a_d"]), jnp.asarray(st["edge_valid"]),
        jnp.asarray(st["node_cnt"]),
        jnp.asarray(st["gidx"]), jnp.asarray(st["lidx"]),
        num_classes=NUM_CLASSES, graphs_per_step=2)
    out = jax.block_until_ready(out)

    assert out.shape == (NUM_GRAPHS, NUM_CLASSES)
    assert bool(jnp.all(jnp.isfinite(out)))
    # log-probabilities: each row should (approximately) exp-sum to 1.
    assert jnp.allclose(jnp.exp(out).sum(-1), 1.0, atol=1e-4)

    # Compare against the pure-JAX f32 reference (loose tol: bf16 MXU matmuls).
    ref = net_reference(params, x, edge_index, batch, NUM_GRAPHS)
    np.testing.assert_allclose(np.asarray(out), np.asarray(ref),
                               atol=5e-2, rtol=0.0)
    print("KERNEL_OK")
</pallas_src>

<mosaic_0001>
module attributes {stable_mosaic.version = 11 : i64} {
  func.func @kernel(%arg0: i32, %arg1: memref<4xi32, #tpu.memory_space<smem>>, %arg2: memref<2x8x128xf32, #tpu.memory_space<vmem>>, %arg3: memref<2x16x8xbf16, #tpu.memory_space<vmem>>, %arg4: memref<2x16x1xbf16, #tpu.memory_space<vmem>>, %arg5: memref<1408x128xbf16, #tpu.memory_space<vmem>>, %arg6: memref<8x128xf32, #tpu.memory_space<vmem>>, %arg7: memref<1x2x128xf32, #tpu.memory_space<vmem>>) attributes {dimension_semantics = [#tpu.dimension_semantics<parallel>], iteration_bounds = array<i64: 2>, scalar_prefetch = 1 : i64, scratch_operands = 0 : i64, tpu.core_type = #tpu.core_type<tc>, window_params = [{transform_indices = @transform_0, window_bounds = array<i64: 2, 8, 128>}, {transform_indices = @transform_1, window_bounds = array<i64: 2, 16, 8>}, {transform_indices = @transform_2, window_bounds = array<i64: 2, 16, 1>}, {pipeline_mode = #tpu.pipeline_mode<synchronous>, transform_indices = @transform_3, window_bounds = array<i64: 1408, 128>}, {pipeline_mode = #tpu.pipeline_mode<synchronous>, transform_indices = @transform_4, window_bounds = array<i64: 8, 128>}, {transform_indices = @transform_5, window_bounds = array<i64: 1, 2, 128>}]} {
    %c0 = arith.constant 0 : index
    %c0_0 = arith.constant 0 : index
    %c0_1 = arith.constant 0 : index
    %0 = vector.load %arg3[%c0, %c0_0, %c0_1] : memref<2x16x8xbf16, #tpu.memory_space<vmem>>, vector<2x16x8xbf16>
    %c0_2 = arith.constant 0 : index
    %c0_3 = arith.constant 0 : index
    %c0_4 = arith.constant 0 : index
    %1 = vector.load %arg4[%c0_2, %c0_3, %c0_4] : memref<2x16x1xbf16, #tpu.memory_space<vmem>>, vector<2x16x1xbf16>
    %2 = arith.extf %1 : vector<2x16x1xbf16> to vector<2x16x1xf32>
    %c0_5 = arith.constant 0 : index
    %c0_6 = arith.constant 0 : index
    %c0_7 = arith.constant 0 : index
    %3 = vector.load %arg2[%c0_5, %c0_6, %c0_7] : memref<2x8x128xf32, #tpu.memory_space<vmem>>, vector<2x8x128xf32>
    %c0_8 = arith.constant 0 : index
    %c0_9 = arith.constant 0 : index
    %4 = vector.load %arg5[%c0_8, %c0_9] : memref<1408x128xbf16, #tpu.memory_space<vmem>>, vector<128x128xbf16>
    %c128 = arith.constant 128 : index
    %c0_10 = arith.constant 0 : index
    %5 = vector.load %arg5[%c128, %c0_10] : memref<1408x128xbf16, #tpu.memory_space<vmem>>, vector<128x128xbf16>
    %c0_11 = arith.constant 0 : index
    %c0_12 = arith.constant 0 : index
    %6 = vector.load %arg6[%c0_11, %c0_12] : memref<8x128xf32, #tpu.memory_space<vmem>>, vector<1x128xf32>
    %c256 = arith.constant 256 : index
    %c0_13 = arith.constant 0 : index
    %7 = vector.load %arg5[%c256, %c0_13] : memref<1408x128xbf16, #tpu.memory_space<vmem>>, vector<128x128xbf16>
    %c1 = arith.constant 1 : index
    %c0_14 = arith.constant 0 : index
    %8 = vector.load %arg6[%c1, %c0_14] : memref<8x128xf32, #tpu.memory_space<vmem>>, vector<1x128xf32>
    %9 = vector.shape_cast %3 : vector<2x8x128xf32> to vector<16x128xf32>
    %10 = arith.truncf %9 : vector<16x128xf32> to vector<16x128xbf16>
    %cst = arith.constant dense<0.000000e+00> : vector<16x128xf32>
    %11 = tpu.matmul %10, %4, %cst {dimension_numbers = #tpu.dot_dimension_numbers<[1], [0], [0], [1], [0, 0, 1, 1], [], []>} : vector<16x128xbf16>, vector<128x128xbf16>, vector<16x128xf32> -> vector<16x128xf32>
    %cst_15 = arith.constant dense<0.000000e+00> : vector<16x128xf32>
    %12 = tpu.matmul %10, %5, %cst_15 {dimension_numbers = #tpu.dot_dimension_numbers<[1], [0], [0], [1], [0, 0, 1, 1], [], []>} : vector<16x128xbf16>, vector<128x128xbf16>, vector<16x128xf32> -> vector<16x128xf32>
    %13 = vector.shape_cast %12 : vector<16x128xf32> to vector<2x8x128xf32>
    %14 = arith.truncf %13 : vector<2x8x128xf32> to vector<2x8x128xbf16>
    "tpu.trace_start"() <{level = 10 : i32, message = "gen,gnh->geh"}> : () -> ()
    %cst_16 = arith.constant dense<0.000000e+00> : vector<2x16x128xf32>
    %15 = tpu.matmul %0, %14, %cst_16 {dimension_numbers = #tpu.dot_dimension_numbers<[2], [1], [1], [2], [0, 0, 0, 1, 1, 2], [0], [0]>} : vector<2x16x8xbf16>, vector<2x8x128xbf16>, vector<2x16x128xf32> -> vector<2x16x128xf32>
    "tpu.trace_stop"() : () -> ()
    %16 = vector.shape_cast %11 : vector<16x128xf32> to vector<2x1x8x128xf32>
    %17 = vector.shape_cast %15 : vector<2x16x128xf32> to vector<2x2x8x128xf32>
    %18 = vector.broadcast %16 : vector<2x1x8x128xf32> to vector<2x2x8x128xf32>
    %19 = arith.addf %17, %18 : vector<2x2x8x128xf32>
    %20 = vector.shape_cast %6 : vector<1x128xf32> to vector<1x1x1x128xf32>
    %21 = vector.broadcast %20 : vector<1x1x1x128xf32> to vector<2x2x8x128xf32>
    %22 = arith.addf %19, %21 : vector<2x2x8x128xf32>
    %cst_17 = arith.constant 0.000000e+00 : f32
    %23 = vector.broadcast %cst_17 : f32 to vector<2x2x8x128xf32>
    %24 = arith.maximumf %22, %23 : vector<2x2x8x128xf32>
    %25 = vector.shape_cast %24 : vector<2x2x8x128xf32> to vector<32x128xf32>
    %26 = arith.truncf %25 : vector<32x128xf32> to vector<32x128xbf16>
    %cst_18 = arith.constant dense<0.000000e+00> : vector<32x128xf32>
    %27 = tpu.matmul %26, %7, %cst_18 {dimension_numbers = #tpu.dot_dimension_numbers<[1], [0], [0], [1], [0, 0, 1, 1], [], []>} : vector<32x128xbf16>, vector<128x128xbf16>, vector<32x128xf32> -> vector<32x128xf32>
    %28 = vector.broadcast %8 : vector<1x128xf32> to vector<32x128xf32>
    %29 = arith.addf %27, %28 : vector<32x128xf32>
    %cst_19 = arith.constant 0.000000e+00 : f32
    %30 = vector.broadcast %cst_19 : f32 to vector<32x128xf32>
    %31 = arith.maximumf %29, %30 : vector<32x128xf32>
    %32 = vector.shape_cast %31 : vector<32x128xf32> to vector<2x16x128xf32>
    %33 = vector.broadcast %2 : vector<2x16x1xf32> to vector<2x16x128xf32>
    %34 = arith.mulf %32, %33 : vector<2x16x128xf32>
    %35 = vector.extract_strided_slice %34 {offsets = [0, 0, 0], sizes = [2, 8, 128], strides = [1, 1, 1]} : vector<2x16x128xf32> to vector<2x8x128xf32>
    %36 = vector.extract_strided_slice %34 {offsets = [0, 8, 0], sizes = [2, 8, 128], strides = [1, 1, 1]} : vector<2x16x128xf32> to vector<2x8x128xf32>
    %37 = arith.maximumf %35, %36 : vector<2x8x128xf32>
    %c384 = arith.constant 384 : index
    %c0_20 = arith.constant 0 : index
    %38 = vector.load %arg5[%c384, %c0_20] : memref<1408x128xbf16, #tpu.memory_space<vmem>>, vector<128x128xbf16>
    %c512 = arith.constant 512 : index
    %c0_21 = arith.constant 0 : index
    %39 = vector.load %arg5[%c512, %c0_21] : memref<1408x128xbf16, #tpu.memory_space<vmem>>, vector<128x128xbf16>
    %c2 = arith.constant 2 : index
    %c0_22 = arith.constant 0 : index
    %40 = vector.load %arg6[%c2, %c0_22] : memref<8x128xf32, #tpu.memory_space<vmem>>, vector<1x128xf32>
    %c640 = arith.constant 640 : index
    %c0_23 = arith.constant 0 : index
    %41 = vector.load %arg5[%c640, %c0_23] : memref<1408x128xbf16, #tpu.memory_space<vmem>>, vector<128x128xbf16>
    %c3 = arith.constant 3 : index
    %c0_24 = arith.constant 0 : index
    %42 = vector.load %arg6[%c3, %c0_24] : memref<8x128xf32, #tpu.memory_space<vmem>>, vector<1x128xf32>
    %43 = vector.shape_cast %37 : vector<2x8x128xf32> to vector<16x128xf32>
    %44 = arith.truncf %43 : vector<16x128xf32> to vector<16x128xbf16>
    %cst_25 = arith.constant dense<0.000000e+00> : vector<16x128xf32>
    %45 = tpu.matmul %44, %38, %cst_25 {dimension_numbers = #tpu.dot_dimension_numbers<[1], [0], [0], [1], [0, 0, 1, 1], [], []>} : vector<16x128xbf16>, vector<128x128xbf16>, vector<16x128xf32> -> vector<16x128xf32>
    %cst_26 = arith.constant dense<0.000000e+00> : vector<16x128xf32>
    %46 = tpu.matmul %44, %39, %cst_26 {dimension_numbers = #tpu.dot_dimension_numbers<[1], [0], [0], [1], [0, 0, 1, 1], [], []>} : vector<16x128xbf16>, vector<128x128xbf16>, vector<16x128xf32> -> vector<16x128xf32>
    %47 = vector.shape_cast %46 : vector<16x128xf32> to vector<2x8x128xf32>
    %48 = arith.truncf %47 : vector<2x8x128xf32> to vector<2x8x128xbf16>
    "tpu.trace_start"() <{level = 10 : i32, message = "gen,gnh->geh"}> : () -> ()
    %cst_27 = arith.constant dense<0.000000e+00> : vector<2x16x128xf32>
    %49 = tpu.matmul %0, %48, %cst_27 {dimension_numbers = #tpu.dot_dimension_numbers<[2], [1], [1], [2], [0, 0, 0, 1, 1, 2], [0], [0]>} : vector<2x16x8xbf16>, vector<2x8x128xbf16>, vector<2x16x128xf32> -> vector<2x16x128xf32>
    "tpu.trace_stop"() : () -> ()
    %50 = vector.shape_cast %45 : vector<16x128xf32> to vector<2x1x8x128xf32>
    %51 = vector.shape_cast %49 : vector<2x16x128xf32> to vector<2x2x8x128xf32>
    %52 = vector.broadcast %50 : vector<2x1x8x128xf32> to vector<2x2x8x128xf32>
    %53 = arith.addf %51, %52 : vector<2x2x8x128xf32>
    %54 = vector.shape_cast %40 : vector<1x128xf32> to vector<1x1x1x128xf32>
    %55 = vector.broadcast %54 : vector<1x1x1x128xf32> to vector<2x2x8x128xf32>
    %56 = arith.addf %53, %55 : vector<2x2x8x128xf32>
    %cst_28 = arith.constant 0.000000e+00 : f32
    %57 = vector.broadcast %cst_28 : f32 to vector<2x2x8x128xf32>
    %58 = arith.maximumf %56, %57 : vector<2x2x8x128xf32>
    %59 = vector.shape_cast %58 : vector<2x2x8x128xf32> to vector<32x128xf32>
    %60 = arith.truncf %59 : vector<32x128xf32> to vector<32x128xbf16>
    %cst_29 = arith.constant dense<0.000000e+00> : vector<32x128xf32>
    %61 = tpu.matmul %60, %41, %cst_29 {dimension_numbers = #tpu.dot_dimension_numbers<[1], [0], [0], [1], [0, 0, 1, 1], [], []>} : vector<32x128xbf16>, vector<128x128xbf16>, vector<32x128xf32> -> vector<32x128xf32>
    %62 = vector.broadcast %42 : vector<1x128xf32> to vector<32x128xf32>
    %63 = arith.addf %61, %62 : vector<32x128xf32>
    %cst_30 = arith.constant 0.000000e+00 : f32
    %64 = vector.broadcast %cst_30 : f32 to vector<32x128xf32>
    %65 = arith.maximumf %63, %64 : vector<32x128xf32>
    %66 = vector.shape_cast %65 : vector<32x128xf32> to vector<2x16x128xf32>
    %67 = vector.broadcast %2 : vector<2x16x1xf32> to vector<2x16x128xf32>
    %68 = arith.mulf %66, %67 : vector<2x16x128xf32>
    %69 = vector.extract_strided_slice %68 {offsets = [0, 0, 0], sizes = [2, 8, 128], strides = [1, 1, 1]} : vector<2x16x128xf32> to vector<2x8x128xf32>
    %70 = vector.extract_strided_slice %68 {offsets = [0, 8, 0], sizes = [2, 8, 128], strides = [1, 1, 1]} : vector<2x16x128xf32> to vector<2x8x128xf32>
    %71 = arith.maximumf %69, %70 : vector<2x8x128xf32>
    %c768 = arith.constant 768 : index
    %c0_31 = arith.constant 0 : index
    %72 = vector.load %arg5[%c768, %c0_31] : memref<1408x128xbf16, #tpu.memory_space<vmem>>, vector<128x128xbf16>
    %c896 = arith.constant 896 : index
    %c0_32 = arith.constant 0 : index
    %73 = vector.load %arg5[%c896, %c0_32] : memref<1408x128xbf16, #tpu.memory_space<vmem>>, vector<128x128xbf16>
    %c4 = arith.constant 4 : index
    %c0_33 = arith.constant 0 : index
    %74 = vector.load %arg6[%c4, %c0_33] : memref<8x128xf32, #tpu.memory_space<vmem>>, vector<1x128xf32>
    %c1024 = arith.constant 1024 : index
    %c0_34 = arith.constant 0 : index
    %75 = vector.load %arg5[%c1024, %c0_34] : memref<1408x128xbf16, #tpu.memory_space<vmem>>, vector<128x128xbf16>
    %c5 = arith.constant 5 : index
    %c0_35 = arith.constant 0 : index
    %76 = vector.load %arg6[%c5, %c0_35] : memref<8x128xf32, #tpu.memory_space<vmem>>, vector<1x128xf32>
    %77 = vector.shape_cast %71 : vector<2x8x128xf32> to vector<16x128xf32>
    %78 = arith.truncf %77 : vector<16x128xf32> to vector<16x128xbf16>
    %cst_36 = arith.constant dense<0.000000e+00> : vector<16x128xf32>
    %79 = tpu.matmul %78, %72, %cst_36 {dimension_numbers = #tpu.dot_dimension_numbers<[1], [0], [0], [1], [0, 0, 1, 1], [], []>} : vector<16x128xbf16>, vector<128x128xbf16>, vector<16x128xf32> -> vector<16x128xf32>
    %cst_37 = arith.constant dense<0.000000e+00> : vector<16x128xf32>
    %80 = tpu.matmul %78, %73, %cst_37 {dimension_numbers = #tpu.dot_dimension_numbers<[1], [0], [0], [1], [0, 0, 1, 1], [], []>} : vector<16x128xbf16>, vector<128x128xbf16>, vector<16x128xf32> -> vector<16x128xf32>
    %81 = vector.shape_cast %80 : vector<16x128xf32> to vector<2x8x128xf32>
    %82 = arith.truncf %81 : vector<2x8x128xf32> to vector<2x8x128xbf16>
    "tpu.trace_start"() <{level = 10 : i32, message = "gen,gnh->geh"}> : () -> ()
    %cst_38 = arith.constant dense<0.000000e+00> : vector<2x16x128xf32>
    %83 = tpu.matmul %0, %82, %cst_38 {dimension_numbers = #tpu.dot_dimension_numbers<[2], [1], [1], [2], [0, 0, 0, 1, 1, 2], [0], [0]>} : vector<2x16x8xbf16>, vector<2x8x128xbf16>, vector<2x16x128xf32> -> vector<2x16x128xf32>
    "tpu.trace_stop"() : () -> ()
    %84 = vector.shape_cast %79 : vector<16x128xf32> to vector<2x1x8x128xf32>
    %85 = vector.shape_cast %83 : vector<2x16x128xf32> to vector<2x2x8x128xf32>
    %86 = vector.broadcast %84 : vector<2x1x8x128xf32> to vector<2x2x8x128xf32>
    %87 = arith.addf %85, %86 : vector<2x2x8x128xf32>
    %88 = vector.shape_cast %74 : vector<1x128xf32> to vector<1x1x1x128xf32>
    %89 = vector.broadcast %88 : vector<1x1x1x128xf32> to vector<2x2x8x128xf32>
    %90 = arith.addf %87, %89 : vector<2x2x8x128xf32>
    %cst_39 = arith.constant 0.000000e+00 : f32
    %91 = vector.broadcast %cst_39 : f32 to vector<2x2x8x128xf32>
    %92 = arith.maximumf %90, %91 : vector<2x2x8x128xf32>
    %93 = vector.shape_cast %92 : vector<2x2x8x128xf32> to vector<32x128xf32>
    %94 = arith.truncf %93 : vector<32x128xf32> to vector<32x128xbf16>
    %cst_40 = arith.constant dense<0.000000e+00> : vector<32x128xf32>
    %95 = tpu.matmul %94, %75, %cst_40 {dimension_numbers = #tpu.dot_dimension_numbers<[1], [0], [0], [1], [0, 0, 1, 1], [], []>} : vector<32x128xbf16>, vector<128x128xbf16>, vector<32x128xf32> -> vector<32x128xf32>
    %96 = vector.broadcast %76 : vector<1x128xf32> to vector<32x128xf32>
    %97 = arith.addf %95, %96 : vector<32x128xf32>
    %cst_41 = arith.constant 0.000000e+00 : f32
    %98 = vector.broadcast %cst_41 : f32 to vector<32x128xf32>
    %99 = arith.maximumf %97, %98 : vector<32x128xf32>
    %100 = vector.shape_cast %99 : vector<32x128xf32> to vector<2x16x128xf32>
    %101 = vector.broadcast %2 : vector<2x16x1xf32> to vector<2x16x128xf32>
    %102 = arith.mulf %100, %101 : vector<2x16x128xf32>
    %103 = vector.extract_strided_slice %102 {offsets = [0, 0, 0], sizes = [2, 8, 128], strides = [1, 1, 1]} : vector<2x16x128xf32> to vector<2x8x128xf32>
    %104 = vector.extract_strided_slice %102 {offsets = [0, 8, 0], sizes = [2, 8, 128], strides = [1, 1, 1]} : vector<2x16x128xf32> to vector<2x8x128xf32>
    %105 = arith.maximumf %103, %104 : vector<2x8x128xf32>
    %c2_i32 = arith.constant 2 : i32
    %106 = arith.muli %arg0, %c2_i32 : i32
    %107 = tpu.iota {dimensions = array<i32: 0>} : vector<2x1xi32>
    %c0_i32 = arith.constant 0 : i32
    %108 = vector.broadcast %c0_i32 : i32 to vector<2x1xi32>
    %c0_i32_42 = arith.constant 0 : i32
    %109 = vector.broadcast %c0_i32_42 : i32 to vector<2x1xi32>
    %110 = arith.cmpi eq, %107, %109 : vector<2x1xi32>
    %c0_i32_43 = arith.constant 0 : i32
    %111 = arith.addi %106, %c0_i32_43 : i32
    %112 = arith.index_cast %111 : i32 to index
    %113 = memref.load %arg1[%112] : memref<4xi32, #tpu.memory_space<smem>>
    %114 = vector.broadcast %113 : i32 to vector<2x1xi32>
    %115 = arith.select %110, %114, %108 : vector<2x1xi1>, vector<2x1xi32>
    %c1_i32 = arith.constant 1 : i32
    %116 = vector.broadcast %c1_i32 : i32 to vector<2x1xi32>
    %117 = arith.cmpi eq, %107, %116 : vector<2x1xi32>
    %c1_i32_44 = arith.constant 1 : i32
    %118 = arith.addi %106, %c1_i32_44 : i32
    %119 = arith.index_cast %118 : i32 to index
    %120 = memref.load %arg1[%119] : memref<4xi32, #tpu.memory_space<smem>>
    %121 = vector.broadcast %120 : i32 to vector<2x1xi32>
    %122 = arith.select %117, %121, %115 : vector<2x1xi1>, vector<2x1xi32>
    %123 = arith.sitofp %122 : vector<2x1xi32> to vector<2x1xf32>
    %cst_45 = arith.constant 1.000000e+00 : f32
    %124 = vector.broadcast %cst_45 : f32 to vector<2x1xf32>
    %125 = arith.maximumf %123, %124 : vector<2x1xf32>
    %cst_46 = arith.constant dense<0.000000e+00> : vector<2x128xf32>
    %126 = vector.multi_reduction <add>, %105, %cst_46 [1] : vector<2x8x128xf32> to vector<2x128xf32>
    %127 = vector.broadcast %125 : vector<2x1xf32> to vector<2x128xf32>
    %128 = arith.divf %126, %127 : vector<2x128xf32>
    %129 = arith.truncf %128 : vector<2x128xf32> to vector<2x128xbf16>
    %c1152 = arith.constant 1152 : index
    %c0_47 = arith.constant 0 : index
    %130 = vector.load %arg5[%c1152, %c0_47] : memref<1408x128xbf16, #tpu.memory_space<vmem>>, vector<128x128xbf16>
    %cst_48 = arith.constant dense<0.000000e+00> : vector<2x128xf32>
    %131 = tpu.matmul %129, %130, %cst_48 {dimension_numbers = #tpu.dot_dimension_numbers<[1], [0], [0], [1], [0, 0, 1, 1], [], []>} : vector<2x128xbf16>, vector<128x128xbf16>, vector<2x128xf32> -> vector<2x128xf32>
    %c6 = arith.constant 6 : index
    %c0_49 = arith.constant 0 : index
    %132 = vector.load %arg6[%c6, %c0_49] : memref<8x128xf32, #tpu.memory_space<vmem>>, vector<1x128xf32>
    %133 = vector.broadcast %132 : vector<1x128xf32> to vector<2x128xf32>
    %134 = arith.addf %131, %133 : vector<2x128xf32>
    %cst_50 = arith.constant 0.000000e+00 : f32
    %135 = vector.broadcast %cst_50 : f32 to vector<2x128xf32>
    %136 = arith.maximumf %134, %135 : vector<2x128xf32>
    %137 = arith.truncf %136 : vector<2x128xf32> to vector<2x128xbf16>
    %c1280 = arith.constant 1280 : index
    %c0_51 = arith.constant 0 : index
    %138 = vector.load %arg5[%c1280, %c0_51] : memref<1408x128xbf16, #tpu.memory_space<vmem>>, vector<128x128xbf16>
    %cst_52 = arith.constant dense<0.000000e+00> : vector<2x128xf32>
    %139 = tpu.matmul %137, %138, %cst_52 {dimension_numbers = #tpu.dot_dimension_numbers<[1], [0], [0], [1], [0, 0, 1, 1], [], []>} : vector<2x128xbf16>, vector<128x128xbf16>, vector<2x128xf32> -> vector<2x128xf32>
    %c7 = arith.constant 7 : index
    %c0_53 = arith.constant 0 : index
    %140 = vector.load %arg6[%c7, %c0_53] : memref<8x128xf32, #tpu.memory_space<vmem>>, vector<1x128xf32>
    %141 = vector.broadcast %140 : vector<1x128xf32> to vector<2x128xf32>
    %142 = arith.addf %139, %141 : vector<2x128xf32>
    %cst_54 = arith.constant 0.000000e+00 : f32
    %143 = vector.broadcast %cst_54 : f32 to vector<2x128xf32>
    %144 = arith.maximumf %142, %143 : vector<2x128xf32>
    %145 = tpu.iota {dimensions = array<i32: 1>} : vector<2x128xi32>
    %c2_i32_55 = arith.constant 2 : i32
    %146 = vector.broadcast %c2_i32_55 : i32 to vector<2x128xi32>
    %147 = arith.cmpi slt, %145, %146 : vector<2x128xi32>
    %cst_56 = arith.constant -1.000000e+30 : f32
    %148 = vector.broadcast %cst_56 : f32 to vector<2x128xf32>
    %149 = arith.select %147, %144, %148 : vector<2x128xi1>, vector<2x128xf32>
    %cst_57 = arith.constant dense<0xFF800000> : vector<2xf32>
    %150 = vector.multi_reduction <maximumf>, %149, %cst_57 [1] : vector<2x128xf32> to vector<2xf32>
    %151 = vector.shape_cast %150 : vector<2xf32> to vector<2x1xf32>
    %152 = vector.broadcast %151 : vector<2x1xf32> to vector<2x128xf32>
    %153 = arith.subf %149, %152 : vector<2x128xf32>
    %154 = math.exp %153 : vector<2x128xf32>
    %cst_58 = arith.constant dense<0.000000e+00> : vector<2xf32>
    %155 = vector.multi_reduction <add>, %154, %cst_58 [1] : vector<2x128xf32> to vector<2xf32>
    %156 = vector.shape_cast %155 : vector<2xf32> to vector<2x1xf32>
    %157 = math.log %156 : vector<2x1xf32>
    %158 = arith.addf %151, %157 : vector<2x1xf32>
    %159 = vector.broadcast %158 : vector<2x1xf32> to vector<2x128xf32>
    %160 = arith.subf %149, %159 : vector<2x128xf32>
    %c0_59 = arith.constant 0 : index
    %c0_60 = arith.constant 0 : index
    %c0_61 = arith.constant 0 : index
    %161 = vector.load %arg7[%c0_59, %c0_60, %c0_61] : memref<1x2x128xf32, #tpu.memory_space<vmem>>, vector<1x2x128xf32>
    %162 = vector.shape_cast %161 : vector<1x2x128xf32> to vector<2x128xf32>
    %163 = vector.shape_cast %160 : vector<2x128xf32> to vector<1x2x128xf32>
    tpu.vector_store %arg7[%c0_59, %c0_60, %c0_61], %163 {strides = array<i32>} : memref<1x2x128xf32, #tpu.memory_space<vmem>>, vector<1x2x128xf32>,
    return
  }
  func.func @transform_0(%arg0: i32, %arg1: memref<4xi32, #tpu.memory_space<smem>>) -> (i32, i32, i32) {
    %c0_i32 = arith.constant 0 : i32
    %c0_i32_0 = arith.constant 0 : i32
    %c0_i32_1 = arith.constant 0 : i32
    return %arg0, %c0_i32, %c0_i32_0 : i32, i32, i32
  }
  func.func @transform_1(%arg0: i32, %arg1: memref<4xi32, #tpu.memory_space<smem>>) -> (i32, i32, i32) {
    %c0_i32 = arith.constant 0 : i32
    %c0_i32_0 = arith.constant 0 : i32
    %c0_i32_1 = arith.constant 0 : i32
    return %arg0, %c0_i32, %c0_i32_0 : i32, i32, i32
  }
  func.func @transform_2(%arg0: i32, %arg1: memref<4xi32, #tpu.memory_space<smem>>) -> (i32, i32, i32) {
    %c0_i32 = arith.constant 0 : i32
    %c0_i32_0 = arith.constant 0 : i32
    %c0_i32_1 = arith.constant 0 : i32
    return %arg0, %c0_i32, %c0_i32_0 : i32, i32, i32
  }
  func.func @transform_3(%arg0: i32, %arg1: memref<4xi32, #tpu.memory_space<smem>>) -> (i32, i32) {
    %c0_i32 = arith.constant 0 : i32
    %c0_i32_0 = arith.constant 0 : i32
    %c0_i32_1 = arith.constant 0 : i32
    return %c0_i32, %c0_i32_0 : i32, i32
  }
  func.func @transform_4(%arg0: i32, %arg1: memref<4xi32, #tpu.memory_space<smem>>) -> (i32, i32) {
    %c0_i32 = arith.constant 0 : i32
    %c0_i32_0 = arith.constant 0 : i32
    %c0_i32_1 = arith.constant 0 : i32
    return %c0_i32, %c0_i32_0 : i32, i32
  }
  func.func @transform_5(%arg0: i32, %arg1: memref<4xi32, #tpu.memory_space<smem>>) -> (i32, i32, i32) {
    %c0_i32 = arith.constant 0 : i32
    %c0_i32_0 = arith.constant 0 : i32
    %c0_i32_1 = arith.constant 0 : i32
    return %arg0, %c0_i32, %c0_i32_0 : i32, i32, i32
  }
}

</mosaic_0001>

<bundles_post_ra>
// kernel: net_forward.1
= control target key start
LH: loop header
LB: loop body
LE: loop exit
PB: predicated region body
PF: predicated region fallthrough
CT: control target
= control target key end

     0   :  { %s3205_s0 = inlined_call_operand.vmem [shape: s32[4], index: 0, kind: input, shape index: {}]   ;;  %s3206_s1 = inlined_call_operand.vmem [shape: f32[4,8,128], index: 1, kind: input, shape index: {}]   ;;  %s3207_s2 = inlined_call_operand.vmem [shape: bf16[4,16,8], index: 2, kind: input, shape index: {}]   ;;  %s3208_s3 = inlined_call_operand.vmem [shape: bf16[4,16,1], index: 3, kind: input, shape index: {}]   ;;  %s3209_s4 = inlined_call_operand.vmem [shape: bf16[1408,128], index: 4, kind: input, shape index: {}]   ;;  %s3210_s5 = inlined_call_operand.vmem [shape: f32[8,128], index: 5, kind: input, shape index: {}]   ;;  %s3211_s6 = inlined_call_operand.vmem [shape: f32[2,2,128], index: 6, kind: output, shape index: {}]  }
   0x1   :  { %s11_s23 = sshll.u32 %s3205_s0, 4  ;;  %s12_s23 = int_to_ptr.vmem [resolvable:$true] %s11_s23 }
   0x2   :  { %s2664_s24 = scalar_lea.vmem %s12_s23, 16  ;;  %p2669_p1 = scmp.lt.s32.totalorder %s12_s23, %s12_s23 }
   0x3   :  { %p2665_p0 = scmp.ne.s32.totalorder %s12_s23, %s2664_s24  ;;  %p2670_p2 = scmp.lt.s32.totalorder %s2664_s24, %s2664_s24 }
   0x5   :  { %p2671_p3 = por %p2670_p2, %p2669_p1 }
   0x7   :  { %p2672_p4 = pnand %p2671_p3, %p2665_p0 }
   0x9   :  { %2675 = shalt.err (!%p2672_p4)  }
   0xa   :  { %s2686_s25 = smov [#allocation3]  }
   0xb   :  { %14 = dma.vmem_to_smem %s12_s23, 16, %s2686_s25, [#allocation2] }
   0xc   :  { %2680 = dma.done.wait [#allocation2], 16 }
   0xd   :  { %2681 = vsyncadd [#allocation2], 4294967280 }
   0xe   :  { %16 = sfence }
   0xf   :  { %s2728_s26 = smov 0  }
  0x10 LB: > { %s2734_s0 = sadd.s32 4294967295, %s2684_s26   ;;  %p2045_p5 = scmp.ge.s32.totalorder %s2684_s26, 1  ;;  %s2684_s26 = sphi %s2728_s26, %s22_s26  }
  0x11   : > { %p219_p6 = scmp.lt.s32.totalorder %s2684_s26, 3 }
  0x13   : > { %p220_p7 = pnand %p2045_p5, %p219_p6 }
  0x14   : > { %s2750_s7 = sshll.u32 (!%p220_p7), %s2734_s0, 1  ;;  %p278_p9 = scmp.lt.s32.totalorder (!%p220_p7), %s2734_s0, 1 }
  0x15   : > { %223 = sbr.rel (%p220_p7) target bundleno = 2651 (0xa5b), region = 40  ;;  %p259_p8 = scmp.lt.s32.totalorder (!%p220_p7), %s2750_s7, 3 }
  0x16   : > { %s1683_s23 = sld [smem:[#allocation3 + %s2750_s7]] (!%p220_p7)  ;;  %s1687_s25 = sadd.s32 (!%p220_p7), 1, %s2750_s7 }
  0x1a   : > { %v2566_v0 = vld [vmem:[%s3209_s4 + $0x78] sm:$0xff]   ;;  %v2687_v1 = vmov 0.0   ;;  %v2567_v2 = vld [vmem:[%s3209_s4 + $0x70] sm:$0xff]   ;;  %vm2688_vm0 = vmmov 0   ;;  %v2568_v3 = vld [vmem:[%s3209_s4 + $0x68] sm:$0xff]   ;;  %s260_s14 = scalar_select %p259_p8, %s2750_s7, 3 }
  0x1b   : > { %2307 = vmatprep.subr.bf16.mxu1 %v2687_v1  ;;  %2287 = vmatprep.subr.bf16.mxu0 %v2687_v1  ;;  %v2574_v4 = vld [vmem:[%s3209_s4 + $0x38] sm:$0xff]   ;;  %v2569_v5 = vld [vmem:[%s3209_s4 + $0x60] sm:$0xff]   ;;  %v2575_v6 = vld [vmem:[%s3209_s4 + $0x30] sm:$0xff]   ;;  %vm537_vm1 = vcmask 1043456   ;;  %vm533_vm2 = vcmask 64512   ;;  %v2689_v43 = vmov 0  }
  0x1c   : > { %2308 = vmatpush3.bf16.msra.mxu1 %v2566_v0  ;;  %2323 = vmatprep.mubr.msk.bf16.mxu1 %vm2688_vm0, %v2687_v1  ;;  %v2570_v7 = vld [vmem:[%s3209_s4 + $0x58] sm:$0xff]   ;;  %s2774_s19 = sshll.u32 %s260_s14, 3  ;;  %v2576_v8 = vld [vmem:[%s3209_s4 + $0x28] sm:$0xff]   ;;  %v2571_v9 = vld [vmem:[%s3209_s4 + $0x50] sm:$0xff]   ;;  %vm1741_vm5 = vcmask 1041409   ;;  %vm1949_vm7 = vcmask 1041408  }
  0x1d   : > { %2309 = vmatprep.subr.bf16.mxu1 %v2687_v1  ;;  %2303 = vmatprep.mubr.msk.bf16.mxu0 %vm2688_vm0, %v2687_v1  ;;  %s2784_s24 = scalar_lea.vmem %s3207_s2, %s2774_s19  ;;  %v2577_v10 = vld [vmem:[%s3209_s4 + $0x20] sm:$0xff]   ;;  %v2572_v11 = vld [vmem:[%s3209_s4 + $0x48] sm:$0xff]   ;;  %s262_s11 = scalar_lea.vmem %s3206_s1, %s2774_s19  ;;  %v2578_v12 = vld [vmem:[%s3209_s4 + $0x18] sm:$0xff]  }
  0x1e   : > { %2288 = vmatpush3.bf16.msra.mxu0 %v2574_v4  ;;  %v2573_v13 = vld [vmem:[%s3209_s4 + $0x40] sm:$0xff]   ;;  %v296_v15 = vld [vmem:[%s262_s11 + $0x8] sm:$0xff]  ;;  %v2579_v16 = vld [vmem:[%s3209_s4 + $0x10] sm:$0xff]   ;;  %s276_s20 = scalar_lea.vmem %s3208_s3, %s2774_s19  ;;  %2555 = vset.pattern.permute.xlu0 %v2689_v43  ;;  %s1688_s19 = sld [smem:[#allocation3 + %s1687_s25]] }
  0x1f   : > { %2289 = vmatprep.subr.bf16.mxu0 %v2687_v1  ;;  %v295_v14 = vld [vmem:[%s262_s11] sm:$0xff]  ;;  %v2580_v17 = vld [vmem:[%s3209_s4 + $0x8] sm:$0xff]   ;;  %v2584_v20 = vld [vmem:[%s3209_s4 + $0xb8] sm:$0xff]   ;;  %s3213_s0 = smov (!%p278_p9, %s2734_s0), 1 }
  0x20   : > { %2310 = vmatpush3.bf16.msra.mxu1 %v2567_v2  ;;  %v347_v18 = vpack.c.bf16 %v296_v15, %v295_v14  ;;  %v2581_v19 = vld [vmem:[%s3209_s4] sm:$0xff]   ;;  %v2585_v21 = vld [vmem:[%s3209_s4 + $0xb0] sm:$0xff]   ;;  %v2586_v22 = vld [vmem:[%s3209_s4 + $0xa8] sm:$0xff]   ;;  %s2054_s12 = sshll.u32 %s3213_s0, 1 }
  0x21   : > { %2311 = vmatprep.subr.bf16.mxu1 %v2687_v1  ;;  %v2837_v27 = vld [vmem:[%s2784_s24] sm:$0xff]   ;;  %v2847_v32 = vld [vmem:[%s2784_s24 + $0x8] sm:$0xff]   ;;  %v2588_v36 = vld [vmem:[%s3209_s4 + $0x98] sm:$0xff]   ;;  %s281_s15 = scalar_lea.vmem %s3211_s6, %s2054_s12 }
  0x22   : > { %2290 = vmatpush3.bf16.msra.mxu0 %v2575_v6  ;;  %v2587_v33 = vld [vmem:[%s3209_s4 + $0xa0] sm:$0xff]   ;;  %v2589_v38 = vld [vmem:[%s3209_s4 + $0x90] sm:$0xff]   ;;  %v2590_v40 = vld [vmem:[%s3209_s4 + $0x88] sm:$0xff]  }
  0x23   : > { %2291 = vmatprep.subr.bf16.mxu0 %v2687_v1  ;;  %v2591_v41 = vld [vmem:[%s3209_s4 + $0x80] sm:$0xff]   ;;  %v2592_v42 = vld [vmem:[%s3209_s4 + $0xf8] sm:$0xff]   ;;  %v2172_v45 = vld [vmem:[%s276_s20 + $0x8] sm:$0xff]  }
  0x24   : > { %2312 = vmatpush3.bf16.msra.mxu1 %v2568_v3  ;;  %v2165_v44 = vld [vmem:[%s276_s20] sm:$0xff]   ;;  %v2170_v48 = vunpack.c.l.bf16 %v2172_v45  ;;  %v2171_v49 = vunpack.c.h.bf16 %v2172_v45  ;;  %v2594_v50 = vld [vmem:[%s3209_s4 + $0xf0] sm:$0xff]   ;;  %v2596_v53 = vld [vmem:[%s3209_s4 + $0xe8] sm:$0xff]  }
  0x25   : > { %2313 = vmatprep.subr.bf16.mxu1 %v2687_v1  ;;  %v2166_v46 = vunpack.c.l.bf16 %v2165_v44  ;;  %v2167_v47 = vunpack.c.h.bf16 %v2165_v44  ;;  %v2598_v54 = vld [vmem:[%s3209_s4 + $0xe0] sm:$0xff]   ;;  %v2593_v14 = vld [vmem:[%s3209_s4 + $0x138] sm:$0xff]  }
  0x26   : > { %2292 = vmatpush3.bf16.msra.mxu0 %v2576_v8  ;;  %v2561_v52 = vpack.i.bf16 %v2171_v49, %v2170_v48  ;;  %v2075_v57 = vld [vmem:[%s3210_s5] ss:$0 sm:$0xff] }
  0x27   : > { %2293 = vmatprep.subr.bf16.mxu0 %v2687_v1  ;;  %v2556_v51 = vpack.i.bf16 %v2167_v47, %v2166_v46 }
  0x28   : > { %2314 = vmatpush3.bf16.msra.mxu1 %v2569_v5 }
  0x29   : > { %2315 = vmatprep.subr.bf16.mxu1 %v2687_v1  ;;  %2557 = vperm.xlu0 %2555, %v2556_v51  }
  0x2a   : > { %2294 = vmatpush3.bf16.msra.mxu0 %v2577_v10 }
  0x2b   : > { %2295 = vmatprep.subr.bf16.mxu0 %v2687_v1 }
  0x2c   : > { %2316 = vmatpush3.bf16.msra.mxu1 %v2570_v7 }
  0x2d   : > { %2317 = vmatprep.subr.bf16.mxu1 %v2687_v1  ;;  %2562 = vperm.xlu0 %2555, %v2561_v52  }
  0x2e   : > { %2296 = vmatpush3.bf16.msra.mxu0 %v2578_v12 }
  0x2f   : > { %2297 = vmatprep.subr.bf16.mxu0 %v2687_v1 }
  0x30   : > { %2318 = vmatpush3.bf16.msra.mxu1 %v2571_v9 }
  0x31   : > { %2319 = vmatprep.subr.bf16.mxu1 %v2687_v1 }
  0x32   : > { %2298 = vmatpush3.bf16.msra.mxu0 %v2579_v16  ;;  %v2595_v16 = vld [vmem:[%s3209_s4 + $0x130] sm:$0xff]  }
  0x33   : > { %2299 = vmatprep.subr.bf16.mxu0 %v2687_v1 }
  0x34   : > { %2320 = vmatpush3.bf16.msra.mxu1 %v2572_v11 }
  0x35   : > { %2321 = vmatprep.subr.bf16.mxu1 %v2687_v1 }
  0x36   : > { %2300 = vmatpush3.bf16.msra.mxu0 %v2580_v17  ;;  %v2597_v17 = vld [vmem:[%s3209_s4 + $0x128] sm:$0xff]  }
  0x37   : > { %2301 = vmatprep.subr.bf16.mxu0 %v2687_v1 }
  0x38   : > { %2322 = vmatpush3.bf16.msra.mxu1 %v2573_v13 }
  0x39   : > { %2327 = vmatprep.subr.bf16.mxu1 %v2687_v1 }
  0x3a   : > { %2302 = vmatpush3.bf16.msra.mxu0 %v2581_v19  ;;  %v2600_v19 = vld [vmem:[%s3209_s4 + $0xd8] sm:$0xff]  }
  0x3b   : > { %2324 = vmatmul.mubr.bf16.vlgmr.msra.gmra.mxu1 %v347_v18  ;;  %2339 = vmatprep.subr.bf16.mxu0 %v2584_v20 }
  0x3c   : > { %2329 = vmatprep.mubr.msk.bf16.mxu1 %vm2688_vm0, %v2687_v1 }
  0x3d   : > { %2304 = vmatmul.mubr.bf16.vlgmr.msra.gmra.mxu0 %v347_v18  ;;  %v2599_v18 = vld [vmem:[%s3209_s4 + $0x120] sm:$0xff]  }
  0x3e   : > { %2340 = vmatpush3.bf16.msra.mxu0 %v2584_v20  ;;  %v2601_v20 = vld [vmem:[%s3209_s4 + $0x118] sm:$0xff]  }
  0x3f   : > { %2341 = vmatprep.subr.bf16.mxu0 %v2585_v21 }
  0x42   : > { %2342 = vmatpush3.bf16.msra.mxu0 %v2585_v21  ;;  %v2602_v21 = vld [vmem:[%s3209_s4 + $0xd0] sm:$0xff]  }
  0x43   : > { %2343 = vmatprep.subr.bf16.mxu0 %v2586_v22 }
  0x46   : > { %2344 = vmatpush3.bf16.msra.mxu0 %v2586_v22  ;;  %v2603_v22 = vld [vmem:[%s3209_s4 + $0x110] sm:$0xff]  }
  0x47   : > { %2345 = vmatprep.subr.bf16.mxu0 %v2587_v33 }
  0x4a   : > { %2346 = vmatpush3.bf16.msra.mxu0 %v2587_v33 }
  0x4b   : > { %2347 = vmatprep.subr.bf16.mxu0 %v2588_v36 }
  0x4e   : > { %2348 = vmatpush3.bf16.msra.mxu0 %v2588_v36 }
  0x4f   : > { %2349 = vmatprep.subr.bf16.mxu0 %v2589_v38 }
  0x52   : > { %2350 = vmatpush3.bf16.msra.mxu0 %v2589_v38 }
  0x53   : > { %2351 = vmatprep.subr.bf16.mxu0 %v2590_v40 }
  0x56   : > { %2352 = vmatpush3.bf16.msra.mxu0 %v2590_v40 }
  0x57   : > { %2353 = vmatprep.subr.bf16.mxu0 %v2591_v41 }
  0x5a   : > { %2354 = vmatpush3.bf16.msra.mxu0 %v2591_v41 }
  0x5b   : > { %2379 = vmatprep.subr.bf16.mxu0 %v2687_v1 }
  0xfb   : > { %v519_v23 = vpop.f32.mrf.mxu1 }
  0xfc   : > { %v526_v24 = vpack.c.bf16 %v519_v23, %v519_v23  ;;  %v2604_v23 = vld [vmem:[%s3209_s4 + $0xc8] sm:$0xff]  }
  0xfd   : > { %v2325_v25 = vpop.f32.mrf.mxu1  ;;  %v430_v34 = vpop.f32.mrf.mxu0 }
  0xfe   : > { %v539_v26 = vsel %vm537_vm1, %v526_v24, 0  ;;  %v2605_v24 = vld [vmem:[%s3209_s4 + $0x108] sm:$0xff]   ;;  %v2606_v25 = vld [vmem:[%s3209_s4 + $0xc0] sm:$0xff]  }
  0xff   : > { %v522_v28 = vpop.f32.mrf.mxu1  ;;  %2328 = vmatpush3.bf16.msra.mxu1 %v539_v26  ;;  %v2305_v35 = vpop.f32.mrf.mxu0  ;;  %v2607_v26 = vld [vmem:[%s3209_s4 + $0x100] sm:$0xff]  }
 0x100   : > { %v527_v29 = vpack.c.bf16 %v522_v28, %v522_v28  ;;  %2333 = vmatprep.subr.bf16.mxu1 %v2687_v1  ;;  %v2558_v28 = vpop.permute.xlu0 %2557 }
 0x101   : > { %v2326_v30 = vpop.f32.mrf.mxu1  ;;  %v433_v37 = vpop.f32.mrf.mxu0  ;;  %v2945_v38 = vunpack.i.l.bf16 %v2558_v28  ;;  %v2951_v46 = vunpack.i.h.bf16 %v2558_v28 }
 0x102   : > { %v591_v31 = vsel %vm537_vm1, %v527_v29, 0  ;;  %2330 = vmatmul.mubr.msk.bf16.vlgmr.msra.gmra.mxu1 %vm533_vm2, %v2837_v27  ;;  %v2076_v30 = vld [vmem:[%s3210_s5 + $0x1] ss:$0 sm:$0xff] }
 0x103   : > { %2334 = vmatpush3.bf16.msra.mxu1 %v591_v31  ;;  %2335 = vmatprep.mubr.msk.bf16.mxu1 %vm2688_vm0, %v2687_v1  ;;  %v2306_v39 = vpop.f32.mrf.mxu0 }
 0x104   : > { %2359 = vmatprep.subr.bf16.mxu1 %v2687_v1 }
 0x10a   : > { %2336 = vmatmul.mubr.msk.bf16.vlgmr.msra.gmra.mxu1 %vm533_vm2, %v2847_v32 }
 0x10b   : > { %2375 = vmatprep.mubr.msk.bf16.mxu1 %vm2688_vm0, %v2687_v1  ;;  %2360 = vmatpush3.bf16.msra.mxu1 %v2592_v42 }
 0x10c   : > { %2361 = vmatprep.subr.bf16.mxu1 %v2687_v1 }
 0x10f   : > { %2362 = vmatpush3.bf16.msra.mxu1 %v2594_v50 }
 0x110   : > { %2363 = vmatprep.subr.bf16.mxu1 %v2687_v1 }
 0x113   : > { %2364 = vmatpush3.bf16.msra.mxu1 %v2596_v53 }
 0x114   : > { %2365 = vmatprep.subr.bf16.mxu1 %v2687_v1 }
 0x117   : > { %2366 = vmatpush3.bf16.msra.mxu1 %v2598_v54 }
 0x118   : > { %2367 = vmatprep.subr.bf16.mxu1 %v2687_v1 }
 0x11b   : > { %2368 = vmatpush3.bf16.msra.mxu1 %v2600_v19 }
 0x11c   : > { %2369 = vmatprep.subr.bf16.mxu1 %v2687_v1 }
 0x11f   : > { %2370 = vmatpush3.bf16.msra.mxu1 %v2602_v21 }
 0x120   : > { %2371 = vmatprep.subr.bf16.mxu1 %v2687_v1 }
 0x123   : > { %2372 = vmatpush3.bf16.msra.mxu1 %v2604_v23 }
 0x124   : > { %2373 = vmatprep.subr.bf16.mxu1 %v2687_v1 }
 0x127   : > { %2374 = vmatpush3.bf16.msra.mxu1 %v2606_v25 }
 0x128   : > { %2399 = vmatprep.subr.bf16.mxu1 %v2687_v1 }
 0x1c2   : > { %v575_v55 = vpop.f32.mrf.mxu1 }
 0x1c3   : > { %v634_v56 = vadd.f32 %v575_v55, %v430_v34 }
 0x1c4   : > { %v2331_v58 = vpop.f32.mrf.mxu1 }
 0x1c5   : > { %v642_v60 = vadd.f32 %v2075_v57, %v634_v56 }
 0x1c6   : > { %v578_v59 = vpop.f32.mrf.mxu1 }
 0x1c7   : > { %v635_v61 = vadd.f32 %v578_v59, %v430_v34  ;;  %v646_v2 = vmax.f32 %v642_v60, 0.0  ;;  %v2563_v34 = vpop.permute.xlu0 %2562 }
 0x1c8   : > { %v2332_v62 = vpop.f32.mrf.mxu1  ;;  %v2947_v39 = vunpack.i.h.bf16 %v2563_v34  ;;  %v2949_v40 = vunpack.i.l.bf16 %v2563_v34 }
 0x1c9   : > { %v643_v63 = vadd.f32 %v2075_v57, %v635_v61 }
 0x1ca   : > { %v627_v0 = vpop.f32.mrf.mxu1 }
 0x1cb   : > { %v647_v3 = vmax.f32 %v643_v63, 0.0  ;;  %v636_v4 = vadd.f32 %v627_v0, %v433_v37  ;;  %v2608_v0 = vld [vmem:[%s3209_s4 + $0x178] sm:$0xff]  }
 0x1cc   : > { %v2337_v5 = vpop.f32.mrf.mxu1 }
 0x1cd   : > { %v650_v6 = vpack.c.bf16 %v647_v3, %v646_v2  ;;  %v644_v8 = vadd.f32 %v2075_v57, %v636_v4  ;;  %v2609_v5 = vld [vmem:[%s3209_s4 + $0x170] sm:$0xff]  }
 0x1ce   : > { %v630_v7 = vpop.f32.mrf.mxu1 }
 0x1cf   : > { %v637_v9 = vadd.f32 %v630_v7, %v433_v37  ;;  %2355 = vmatprep.mubr.bf16.mxu0 %v650_v6  ;;  %v648_v12 = vmax.f32 %v644_v8, 0.0  ;;  %v2610_v6 = vld [vmem:[%s3209_s4 + $0x168] sm:$0xff]   ;;  %v2611_v7 = vld [vmem:[%s3209_s4 + $0x160] sm:$0xff]   ;;  %v2612_v8 = vld [vmem:[%s3209_s4 + $0x158] sm:$0xff]  }
 0x1d0   : > { %v2338_v10 = vpop.f32.mrf.mxu1 }
 0x1d1   : > { %v645_v11 = vadd.f32 %v2075_v57, %v637_v9  ;;  %v2613_v9 = vld [vmem:[%s3209_s4 + $0x150] sm:$0xff]   ;;  %v2614_v10 = vld [vmem:[%s3209_s4 + $0x148] sm:$0xff]  }
 0x1d3   : > { %v649_v13 = vmax.f32 %v645_v11, 0.0  ;;  %v2615_v11 = vld [vmem:[%s3209_s4 + $0x140] sm:$0xff]  }
 0x1d5   : > { %v651_v15 = vpack.c.bf16 %v649_v13, %v648_v12  ;;  %v2616_v12 = vld [vmem:[%s3209_s4 + $0x1b8] sm:$0xff]   ;;  %v2618_v13 = vld [vmem:[%s3209_s4 + $0x1b0] sm:$0xff]  }
 0x1d7   : > { %2356 = vmatmul.mubr.bf16.vlgmr.msra.gmra.mxu0 %v651_v15  ;;  %v2622_v15 = vld [vmem:[%s3209_s4 + $0x1a0] sm:$0xff]  }
 0x1d8   : > { %2380 = vmatpush3.bf16.msra.mxu0 %v2593_v14  ;;  %2395 = vmatprep.mubr.msk.bf16.mxu0 %vm2688_vm0, %v2687_v1  ;;  %v2620_v14 = vld [vmem:[%s3209_s4 + $0x1a8] sm:$0xff]  }
 0x1d9   : > { %2381 = vmatprep.subr.bf16.mxu0 %v2687_v1 }
 0x1dc   : > { %2382 = vmatpush3.bf16.msra.mxu0 %v2595_v16 }
 0x1dd   : > { %2383 = vmatprep.subr.bf16.mxu0 %v2687_v1 }
 0x1e0   : > { %2384 = vmatpush3.bf16.msra.mxu0 %v2597_v17 }
 0x1e1   : > { %2385 = vmatprep.subr.bf16.mxu0 %v2687_v1 }
 0x1e4   : > { %2386 = vmatpush3.bf16.msra.mxu0 %v2599_v18  ;;  %v2103_v18 = vld [vmem:[%s3210_s5 + $0x2] ss:$0 sm:$0xff] }
 0x1e5   : > { %2387 = vmatprep.subr.bf16.mxu0 %v2687_v1 }
 0x1e8   : > { %2388 = vmatpush3.bf16.msra.mxu0 %v2601_v20 }
 0x1e9   : > { %2389 = vmatprep.subr.bf16.mxu0 %v2687_v1 }
 0x1ec   : > { %2390 = vmatpush3.bf16.msra.mxu0 %v2603_v22 }
 0x1ed   : > { %2391 = vmatprep.subr.bf16.mxu0 %v2687_v1 }
 0x1f0   : > { %2392 = vmatpush3.bf16.msra.mxu0 %v2605_v24 }
 0x1f1   : > { %2393 = vmatprep.subr.bf16.mxu0 %v2687_v1 }
 0x1f4   : > { %2394 = vmatpush3.bf16.msra.mxu0 %v2607_v26 }
 0x1f5   : > { %2431 = vmatprep.subr.bf16.mxu0 %v2687_v1 }
 0x297   : > { %v2357_v29 = vpop.f32.mrf.mxu0 }
 0x298   : > { %v747_v33 = vadd.f32 %v2357_v29, %v2076_v30 }
 0x299   : > { %v738_v31 = vpop.f32.mrf.mxu0 }
 0x29a   : > { %v739_v35 = vadd.f32 %v2076_v30, %v738_v31  ;;  %v755_v42 = vmax.f32 %v747_v33, 0.0 }
 0x29b   : > { %v2358_v36 = vpop.f32.mrf.mxu0 }
 0x29c   : > { %v750_v37 = vadd.f32 %v2358_v36, %v2076_v30  ;;  %v753_v43 = vmax.f32 %v739_v35, 0.0  ;;  %v779_v49 = vmul.f32 %v2949_v40, %v755_v42 }
 0x29d   : > { %v741_v41 = vpop.f32.mrf.mxu0 }
 0x29e   : > { %v756_v44 = vmax.f32 %v750_v37, 0.0  ;;  %v742_v45 = vadd.f32 %v2076_v30, %v741_v41  ;;  %v777_v50 = vmul.f32 %v2945_v38, %v753_v43  ;;  %v2617_v43 = vld [vmem:[%s3209_s4 + $0x1f8] sm:$0xff]  }
 0x2a0   : > { %v780_v47 = vmul.f32 %v2947_v39, %v756_v44  ;;  %v754_v48 = vmax.f32 %v742_v45, 0.0  ;;  %v2619_v45 = vld [vmem:[%s3209_s4 + $0x1f0] sm:$0xff]  }
 0x2a2   : > { %v778_v51 = vmul.f32 %v2951_v46, %v754_v48  ;;  %v782_v52 = vmax.f32 %v779_v49, %v780_v47  ;;  %v2621_v47 = vld [vmem:[%s3209_s4 + $0x1e8] sm:$0xff]   ;;  %v2623_v48 = vld [vmem:[%s3209_s4 + $0x1e0] sm:$0xff]   ;;  %v2624_v49 = vld [vmem:[%s3209_s4 + $0x198] sm:$0xff]  }
 0x2a4   : > { %v781_v53 = vmax.f32 %v777_v50, %v778_v51  ;;  %v2625_v50 = vld [vmem:[%s3209_s4 + $0x1d8] sm:$0xff]   ;;  %v2626_v51 = vld [vmem:[%s3209_s4 + $0x190] sm:$0xff]  }
 0x2a6   : > { %v833_v54 = vpack.c.bf16 %v782_v52, %v781_v53  ;;  %v2627_v52 = vld [vmem:[%s3209_s4 + $0x1d0] sm:$0xff]   ;;  %v2628_v53 = vld [vmem:[%s3209_s4 + $0x188] sm:$0xff]  }
 0x2a8   : > { %2376 = vmatmul.mubr.bf16.vlgmr.msra.gmra.mxu1 %v833_v54  ;;  %2396 = vmatmul.mubr.bf16.vlgmr.msra.gmra.mxu0 %v833_v54  ;;  %v2629_v54 = vld [vmem:[%s3209_s4 + $0x1c8] sm:$0xff]  }
 0x2a9   : > { %2401 = vmatprep.mubr.msk.bf16.mxu1 %vm2688_vm0, %v2687_v1  ;;  %2447 = vmatprep.mubr.msk.bf16.mxu0 %vm2688_vm0, %v2687_v1 }
 0x2aa   : > { %2432 = vmatpush3.bf16.msra.mxu0 %v2616_v12 }
 0x2ab   : > { %2433 = vmatprep.subr.bf16.mxu0 %v2687_v1 }
 0x2ae   : > { %2434 = vmatpush3.bf16.msra.mxu0 %v2618_v13 }
 0x2af   : > { %2435 = vmatprep.subr.bf16.mxu0 %v2687_v1 }
 0x2b2   : > { %2436 = vmatpush3.bf16.msra.mxu0 %v2620_v14 }
 0x2b3   : > { %2437 = vmatprep.subr.bf16.mxu0 %v2687_v1 }
 0x2b6   : > { %2438 = vmatpush3.bf16.msra.mxu0 %v2622_v15 }
 0x2b7   : > { %2439 = vmatprep.subr.bf16.mxu0 %v2687_v1 }
 0x2ba   : > { %2440 = vmatpush3.bf16.msra.mxu0 %v2624_v49 }
 0x2bb   : > { %2441 = vmatprep.subr.bf16.mxu0 %v2687_v1 }
 0x2be   : > { %2442 = vmatpush3.bf16.msra.mxu0 %v2626_v51 }
 0x2bf   : > { %2443 = vmatprep.subr.bf16.mxu0 %v2687_v1 }
 0x2c2   : > { %2444 = vmatpush3.bf16.msra.mxu0 %v2628_v53 }
 0x2c3   : > { %2445 = vmatprep.subr.bf16.mxu0 %v2687_v1 }
 0x368   : > { %v916_v55 = vpop.f32.mrf.mxu1  ;;  %v1005_v56 = vpop.f32.mrf.mxu0 }
 0x369   : > { %v1012_v57 = vpack.c.bf16 %v1005_v56, %v1005_v56  ;;  %v2631_v56 = vld [vmem:[%s3209_s4 + $0x1c0] sm:$0xff]  }
 0x36a   : > { %v2377_v58 = vpop.f32.mrf.mxu1  ;;  %v2397_v59 = vpop.f32.mrf.mxu0 }
 0x36b   : > { %v1015_v60 = vsel %vm537_vm1, %v1012_v57, 0  ;;  %v2104_v58 = vld [vmem:[%s3210_s5 + $0x3] ss:$0 sm:$0xff] }
 0x36c   : > { %v2962_v61 = vpop.f32.mrf.mxu1  ;;  %v1008_v62 = vpop.f32.mrf.mxu0  ;;  %2400 = vmatpush3.bf16.msra.mxu1 %v1015_v60 }
 0x36d   : > { %v1013_v63 = vpack.c.bf16 %v1008_v62, %v1008_v62  ;;  %2405 = vmatprep.subr.bf16.mxu1 %v2687_v1 }
 0x36e   : > { %v2378_v2 = vpop.f32.mrf.mxu1  ;;  %v2398_v3 = vpop.f32.mrf.mxu0 }
 0x36f   : > { %v1059_v4 = vsel %vm537_vm1, %v1013_v63, 0  ;;  %2402 = vmatmul.mubr.msk.bf16.vlgmr.msra.gmra.mxu1 %vm533_vm2, %v2837_v27 }
 0x370   : > { %2406 = vmatpush3.bf16.msra.mxu1 %v1059_v4  ;;  %2407 = vmatprep.mubr.msk.bf16.mxu1 %vm2688_vm0, %v2687_v1 }
 0x371   : > { %2411 = vmatprep.subr.bf16.mxu1 %v2608_v0 }
 0x377   : > { %2408 = vmatmul.mubr.msk.bf16.vlgmr.msra.gmra.mxu1 %vm533_vm2, %v2847_v32 }
 0x378   : > { %2412 = vmatpush3.bf16.msra.mxu1 %v2608_v0 }
 0x379   : > { %2413 = vmatprep.subr.bf16.mxu1 %v2609_v5 }
 0x37c   : > { %2414 = vmatpush3.bf16.msra.mxu1 %v2609_v5 }
 0x37d   : > { %2415 = vmatprep.subr.bf16.mxu1 %v2610_v6 }
 0x380   : > { %2416 = vmatpush3.bf16.msra.mxu1 %v2610_v6 }
 0x381   : > { %2417 = vmatprep.subr.bf16.mxu1 %v2611_v7 }
 0x384   : > { %2418 = vmatpush3.bf16.msra.mxu1 %v2611_v7 }
 0x385   : > { %2419 = vmatprep.subr.bf16.mxu1 %v2612_v8 }
 0x388   : > { %2420 = vmatpush3.bf16.msra.mxu1 %v2612_v8 }
 0x389   : > { %2421 = vmatprep.subr.bf16.mxu1 %v2613_v9 }
 0x38c   : > { %2422 = vmatpush3.bf16.msra.mxu1 %v2613_v9 }
 0x38d   : > { %2423 = vmatprep.subr.bf16.mxu1 %v2614_v10 }
 0x390   : > { %2424 = vmatpush3.bf16.msra.mxu1 %v2614_v10 }
 0x391   : > { %2425 = vmatprep.subr.bf16.mxu1 %v2615_v11 }
 0x394   : > { %2426 = vmatpush3.bf16.msra.mxu1 %v2615_v11 }
 0x395   : > { %2451 = vmatprep.subr.bf16.mxu1 %v2687_v1 }
 0x42f   : > { %v1051_v16 = vpop.f32.mrf.mxu1 }
 0x430   : > { %v1102_v17 = vadd.f32 %v1051_v16, %v916_v55 }
 0x431   : > { %v2403_v19 = vpop.f32.mrf.mxu1 }
 0x432   : > { %v1110_v21 = vadd.f32 %v2103_v18, %v1102_v17 }
 0x433   : > { %v1054_v20 = vpop.f32.mrf.mxu1 }
 0x434   : > { %v1103_v22 = vadd.f32 %v1054_v20, %v916_v55  ;;  %v1114_v26 = vmax.f32 %v1110_v21, 0.0  ;;  %v2630_v55 = vld [vmem:[%s3209_s4 + $0x180] sm:$0xff]  }
 0x435   : > { %v2404_v23 = vpop.f32.mrf.mxu1  ;;  %2446 = vmatpush3.bf16.msra.mxu0 %v2630_v55 }
 0x436   : > { %v1111_v24 = vadd.f32 %v2103_v18, %v1103_v22  ;;  %2477 = vmatprep.subr.bf16.mxu0 %v2687_v1  ;;  %v2632_v23 = vld [vmem:[%s3209_s4 + $0x238] sm:$0xff]  }
 0x437   : > { %v1095_v25 = vpop.f32.mrf.mxu1 }
 0x438   : > { %v1115_v28 = vmax.f32 %v1111_v24, 0.0  ;;  %v1104_v29 = vadd.f32 %v1095_v25, %v2962_v61 }
 0x439   : > { %v2409_v30 = vpop.f32.mrf.mxu1 }
 0x43a   : > { %v1118_v31 = vpack.c.bf16 %v1115_v28, %v1114_v26  ;;  %v1112_v34 = vadd.f32 %v2103_v18, %v1104_v29  ;;  %v2633_v28 = vld [vmem:[%s3209_s4 + $0x230] sm:$0xff]   ;;  %v2634_v29 = vld [vmem:[%s3209_s4 + $0x228] sm:$0xff]   ;;  %v2636_v30 = vld [vmem:[%s3209_s4 + $0x218] sm:$0xff]  }
 0x43b   : > { %v1098_v33 = vpop.f32.mrf.mxu1 }
 0x43c   : > { %v1105_v35 = vadd.f32 %v1098_v33, %v2962_v61  ;;  %2427 = vmatprep.mubr.bf16.mxu1 %v1118_v31  ;;  %v1116_v41 = vmax.f32 %v1112_v34, 0.0  ;;  %v2638_v31 = vld [vmem:[%s3209_s4 + $0x208] sm:$0xff]   ;;  %v2639_v33 = vld [vmem:[%s3209_s4 + $0x200] sm:$0xff]  }
 0x43d   : > { %v2410_v36 = vpop.f32.mrf.mxu1 }
 0x43e   : > { %v1113_v37 = vadd.f32 %v2103_v18, %v1105_v35  ;;  %v2131_v36 = vld [vmem:[%s3210_s5 + $0x4] ss:$0 sm:$0xff] }
 0x440   : > { %v1117_v42 = vmax.f32 %v1113_v37, 0.0 }
 0x442   : > { %v1119_v44 = vpack.c.bf16 %v1117_v42, %v1116_v41 }
 0x444   : > { %2428 = vmatmul.mubr.bf16.vlgmr.msra.gmra.mxu1 %v1119_v44 }
 0x445   : > { %2452 = vmatpush3.bf16.msra.mxu1 %v2617_v43  ;;  %2467 = vmatprep.mubr.msk.bf16.mxu1 %vm2688_vm0, %v2687_v1 }
 0x446   : > { %2453 = vmatprep.subr.bf16.mxu1 %v2687_v1 }
 0x449   : > { %2454 = vmatpush3.bf16.msra.mxu1 %v2619_v45 }
 0x44a   : > { %2455 = vmatprep.subr.bf16.mxu1 %v2687_v1 }
 0x44d   : > { %2456 = vmatpush3.bf16.msra.mxu1 %v2621_v47 }
 0x44e   : > { %2457 = vmatprep.subr.bf16.mxu1 %v2687_v1 }
 0x451   : > { %2458 = vmatpush3.bf16.msra.mxu1 %v2623_v48 }
 0x452   : > { %2459 = vmatprep.subr.bf16.mxu1 %v2687_v1 }
 0x455   : > { %2460 = vmatpush3.bf16.msra.mxu1 %v2625_v50 }
 0x456   : > { %2461 = vmatprep.subr.bf16.mxu1 %v2687_v1 }
 0x459   : > { %2462 = vmatpush3.bf16.msra.mxu1 %v2627_v52 }
 0x45a   : > { %2463 = vmatprep.subr.bf16.mxu1 %v2687_v1 }
 0x45d   : > { %2464 = vmatpush3.bf16.msra.mxu1 %v2629_v54 }
 0x45e   : > { %2465 = vmatprep.subr.bf16.mxu1 %v2687_v1 }
 0x461   : > { %2466 = vmatpush3.bf16.msra.mxu1 %v2631_v56 }
 0x462   : > { %2471 = vmatprep.subr.bf16.mxu1 %v2687_v1 }
 0x504   : > { %v2429_v57 = vpop.f32.mrf.mxu1 }
 0x505   : > { %v1215_v60 = vadd.f32 %v2429_v57, %v2104_v58 }
 0x506   : > { %v1206_v59 = vpop.f32.mrf.mxu1 }
 0x507   : > { %v1207_v61 = vadd.f32 %v2104_v58, %v1206_v59  ;;  %v1223_v2 = vmax.f32 %v1215_v60, 0.0 }
 0x508   : > { %v2430_v62 = vpop.f32.mrf.mxu1 }
 0x509   : > { %v1218_v63 = vadd.f32 %v2430_v62, %v2104_v58  ;;  %v1221_v3 = vmax.f32 %v1207_v61, 0.0  ;;  %v1227_v8 = vmul.f32 %v2949_v40, %v1223_v2  ;;  %v2640_v61 = vld [vmem:[%s3209_s4 + $0x278] sm:$0xff]   ;;  %v2641_v62 = vld [vmem:[%s3209_s4 + $0x270] sm:$0xff]  }
 0x50a   : > { %v1209_v0 = vpop.f32.mrf.mxu1  ;;  %v2644_v2 = vld [vmem:[%s3209_s4 + $0x258] sm:$0xff]  }
 0x50b   : > { %v1224_v4 = vmax.f32 %v1218_v63, 0.0  ;;  %v1210_v5 = vadd.f32 %v2104_v58, %v1209_v0  ;;  %v1225_v9 = vmul.f32 %v2945_v38, %v1221_v3  ;;  %v2642_v63 = vld [vmem:[%s3209_s4 + $0x268] sm:$0xff]   ;;  %v2643_v0 = vld [vmem:[%s3209_s4 + $0x260] sm:$0xff]   ;;  %v2645_v3 = vld [vmem:[%s3209_s4 + $0x250] sm:$0xff]  }
 0x50d   : > { %v1228_v6 = vmul.f32 %v2947_v39, %v1224_v4  ;;  %v1222_v7 = vmax.f32 %v1210_v5, 0.0  ;;  %v2646_v4 = vld [vmem:[%s3209_s4 + $0x248] sm:$0xff]   ;;  %v2647_v5 = vld [vmem:[%s3209_s4 + $0x240] sm:$0xff]  }
 0x50f   : > { %v1226_v10 = vmul.f32 %v2951_v46, %v1222_v7  ;;  %v1230_v11 = vmax.f32 %v1227_v8, %v1228_v6  ;;  %v2648_v6 = vld [vmem:[%s3209_s4 + $0x2b8] sm:$0xff]   ;;  %v2649_v7 = vld [vmem:[%s3209_s4 + $0x2b0] sm:$0xff]   ;;  %v2650_v8 = vld [vmem:[%s3209_s4 + $0x2a8] sm:$0xff]  }
 0x511   : > { %v1229_v12 = vmax.f32 %v1225_v9, %v1226_v10  ;;  %v2651_v9 = vld [vmem:[%s3209_s4 + $0x2a0] sm:$0xff]   ;;  %v2652_v10 = vld [vmem:[%s3209_s4 + $0x298] sm:$0xff]  }
 0x513   : > { %v1281_v13 = vpack.c.bf16 %v1230_v11, %v1229_v12  ;;  %v2653_v11 = vld [vmem:[%s3209_s4 + $0x290] sm:$0xff]   ;;  %v1680_v12 = vlaneseq }
 0x515   : > { %2448 = vmatmul.mubr.bf16.vlgmr.msra.gmra.mxu0 %v1281_v13  ;;  %2468 = vmatmul.mubr.bf16.vlgmr.msra.gmra.mxu1 %v1281_v13  ;;  %v1681_v13 = vshrl.u32 %v1680_v12, 7 }
 0x516   : > { %2473 = vmatprep.mubr.msk.bf16.mxu1 %vm2688_vm0, %v2687_v1  ;;  %2479 = vmatprep.mubr.msk.bf16.mxu0 %vm2688_vm0, %v2687_v1 }
 0x517   : > { %vm1682_vm3 = vcmp.eq.s32.totalorder %v1681_v13, 0  ;;  %vm1686_vm4 = vcmp.eq.s32.totalorder %v1681_v13, 1 }
 0x5d5   : > { %v1364_v14 = vpop.f32.mrf.mxu0  ;;  %v1453_v15 = vpop.f32.mrf.mxu1 }
 0x5d6   : > { %v1460_v16 = vpack.c.bf16 %v1453_v15, %v1453_v15 }
 0x5d7   : > { %v2449_v17 = vpop.f32.mrf.mxu0  ;;  %v2469_v18 = vpop.f32.mrf.mxu1 }
 0x5d8   : > { %v1463_v19 = vsel %vm537_vm1, %v1460_v16, 0  ;;  %v1689_v16 = vstv %s1688_s19 }
 0x5d9   : > { %v1367_v20 = vpop.f32.mrf.mxu0  ;;  %v1456_v21 = vpop.f32.mrf.mxu1  ;;  %2472 = vmatpush3.bf16.msra.mxu1 %v1463_v19  ;;  %v2132_v19 = vld [vmem:[%s3210_s5 + $0x5] ss:$0 sm:$0xff] }
 0x5da   : > { %v1461_v22 = vpack.c.bf16 %v1456_v21, %v1456_v21  ;;  %2503 = vmatprep.subr.bf16.mxu1 %v2687_v1 }
 0x5db   : > { %v2450_v24 = vpop.f32.mrf.mxu0  ;;  %v2470_v25 = vpop.f32.mrf.mxu1 }
 0x5dc   : > { %v1507_v26 = vsel %vm537_vm1, %v1461_v22, 0  ;;  %2474 = vmatmul.mubr.msk.bf16.vlgmr.msra.gmra.mxu1 %vm533_vm2, %v2837_v27  ;;  %v2635_v27 = vld [vmem:[%s3209_s4 + $0x220] sm:$0xff]  }
 0x5dd   : > { %2478 = vmatpush3.bf16.msra.mxu0 %v1507_v26  ;;  %2519 = vmatprep.mubr.msk.bf16.mxu1 %vm2688_vm0, %v2687_v1 }
 0x5de   : > { %2483 = vmatprep.subr.bf16.mxu0 %v2632_v23  ;;  %2504 = vmatpush3.bf16.msra.mxu1 %v2640_v61 }
 0x5df   : > { %2505 = vmatprep.subr.bf16.mxu1 %v2687_v1 }
 0x5e0   : > { %2480 = vmatmul.mubr.msk.bf16.vlgmr.msra.gmra.mxu0 %vm533_vm2, %v2847_v32  ;;  %v2637_v32 = vld [vmem:[%s3209_s4 + $0x210] sm:$0xff]  }
 0x5e1   : > { %2484 = vmatpush3.bf16.msra.mxu0 %v2632_v23 }
 0x5e2   : > { %2485 = vmatprep.subr.bf16.mxu0 %v2633_v28  ;;  %2506 = vmatpush3.bf16.msra.mxu1 %v2641_v62 }
 0x5e3   : > { %2507 = vmatprep.subr.bf16.mxu1 %v2687_v1 }
 0x5e5   : > { %2486 = vmatpush3.bf16.msra.mxu0 %v2633_v28 }
 0x5e6   : > { %2487 = vmatprep.subr.bf16.mxu0 %v2634_v29  ;;  %2508 = vmatpush3.bf16.msra.mxu1 %v2642_v63  ;;  %v2654_v63 = vld [vmem:[%s3209_s4 + $0x288] sm:$0xff]  }
 0x5e7   : > { %2509 = vmatprep.subr.bf16.mxu1 %v2687_v1 }
 0x5e9   : > { %2488 = vmatpush3.bf16.msra.mxu0 %v2634_v29 }
 0x5ea   : > { %2489 = vmatprep.subr.bf16.mxu0 %v2635_v27  ;;  %2510 = vmatpush3.bf16.msra.mxu1 %v2643_v0  ;;  %v2655_v0 = vld [vmem:[%s3209_s4 + $0x280] sm:$0xff]  }
 0x5eb   : > { %2511 = vmatprep.subr.bf16.mxu1 %v2687_v1 }
 0x5ed   : > { %2490 = vmatpush3.bf16.msra.mxu0 %v2635_v27 }
 0x5ee   : > { %2491 = vmatprep.subr.bf16.mxu0 %v2636_v30  ;;  %2512 = vmatpush3.bf16.msra.mxu1 %v2644_v2  ;;  %v2142_v2 = vld [vmem:[%s3210_s5 + $0x6] ss:$0 sm:$0xff] }
 0x5ef   : > { %2513 = vmatprep.subr.bf16.mxu1 %v2687_v1 }
 0x5f1   : > { %2492 = vmatpush3.bf16.msra.mxu0 %v2636_v30 }
 0x5f2   : > { %2493 = vmatprep.subr.bf16.mxu0 %v2637_v32  ;;  %2514 = vmatpush3.bf16.msra.mxu1 %v2645_v3 }
 0x5f3   : > { %2515 = vmatprep.subr.bf16.mxu1 %v2687_v1 }
 0x5f5   : > { %2494 = vmatpush3.bf16.msra.mxu0 %v2637_v32 }
 0x5f6   : > { %2495 = vmatprep.subr.bf16.mxu0 %v2638_v31  ;;  %2516 = vmatpush3.bf16.msra.mxu1 %v2646_v4 }
 0x5f7   : > { %2517 = vmatprep.subr.bf16.mxu1 %v2687_v1 }
 0x5f9   : > { %2496 = vmatpush3.bf16.msra.mxu0 %v2638_v31 }
 0x5fa   : > { %2497 = vmatprep.subr.bf16.mxu0 %v2639_v33  ;;  %2518 = vmatpush3.bf16.msra.mxu1 %v2647_v5 }
 0x5fd   : > { %2498 = vmatpush3.bf16.msra.mxu0 %v2639_v33 }
 0x5fe   : > { %2523 = vmatprep.subr.bf16.mxu0 %v2687_v1 }
 0x69c   : > { %v1499_v34 = vpop.f32.mrf.mxu1 }
 0x69d   : > { %v1550_v35 = vadd.f32 %v1499_v34, %v1364_v14 }
 0x69e   : > { %v2475_v37 = vpop.f32.mrf.mxu1 }
 0x69f   : > { %v1558_v43 = vadd.f32 %v2131_v36, %v1550_v35 }
 0x6a0   : > { %v1502_v41 = vpop.f32.mrf.mxu1  ;;  %v1543_v42 = vpop.f32.mrf.mxu0 }
 0x6a1   : > { %v1551_v44 = vadd.f32 %v1502_v41, %v1364_v14  ;;  %v1552_v45 = vadd.f32 %v1543_v42, %v1367_v20  ;;  %v1562_v51 = vmax.f32 %v1558_v43, 0.0  ;;  %v1684_v14 = vstv %s1683_s23 }
 0x6a2   : > { %v2481_v47 = vpop.f32.mrf.mxu0  ;;  %v2476_v48 = vpop.f32.mrf.mxu1  ;;  %v1685_v15 = vsel %vm1682_vm3, %v1684_v14, 0 }
 0x6a3   : > { %v1559_v49 = vadd.f32 %v2131_v36, %v1551_v44  ;;  %v1560_v53 = vadd.f32 %v2131_v36, %v1552_v45  ;;  %v1690_v17 = vsel %vm1686_vm4, %v1689_v16, %v1685_v15 }
 0x6a4   : > { %v1546_v50 = vpop.f32.mrf.mxu0  ;;  %v1691_v18 = vcvt.s32.f32 %v1690_v17 }
 0x6a5   : > { %v1563_v52 = vmax.f32 %v1559_v49, 0.0  ;;  %v1553_v54 = vadd.f32 %v1546_v50, %v1367_v20  ;;  %v1564_v58 = vmax.f32 %v1560_v53, 0.0 }
 0x6a6   : > { %v2482_v55 = vpop.f32.mrf.mxu0  ;;  %v1692_v21 = vmax.f32 %v1691_v18, 1.0 }
 0x6a7   : > { %v1561_v56 = vadd.f32 %v2131_v36, %v1553_v54  ;;  %v1566_v57 = vpack.c.bf16 %v1563_v52, %v1562_v51 }
 0x6a8   : > { %v1706_v26 = vrot.slane %v1692_v21, 1 }
 0x6a9   : > { %v1565_v59 = vmax.f32 %v1561_v56, 0.0  ;;  %2499 = vmatprep.mubr.bf16.mxu0 %v1566_v57 }
 0x6aa   : > { %2656 = vrcp.f32 %v1706_v26 }
 0x6ab   : > { %v1567_v60 = vpack.c.bf16 %v1565_v59, %v1564_v58  ;;  %2658 = vrcp.f32 %v1692_v21 }
 0x6ad   : > { %2500 = vmatmul.mubr.bf16.vlgmr.msra.gmra.mxu0 %v1567_v60 }
 0x6ae   : > { %2539 = vmatprep.mubr.msk.bf16.mxu0 %vm2688_vm0, %v2687_v1  ;;  %2524 = vmatpush3.bf16.msra.mxu0 %v2648_v6 }
 0x6af   : > { %2525 = vmatprep.subr.bf16.mxu0 %v2687_v1 }
 0x6b2   : > { %2526 = vmatpush3.bf16.msra.mxu0 %v2649_v7 }
 0x6b3   : > { %2527 = vmatprep.subr.bf16.mxu0 %v2687_v1 }
 0x6b6   : > { %2528 = vmatpush3.bf16.msra.mxu0 %v2650_v8 }
 0x6b7   : > { %2529 = vmatprep.subr.bf16.mxu0 %v2687_v1 }
 0x6ba   : > { %2530 = vmatpush3.bf16.msra.mxu0 %v2651_v9 }
 0x6bb   : > { %2531 = vmatprep.subr.bf16.mxu0 %v2687_v1 }
 0x6be   : > { %2532 = vmatpush3.bf16.msra.mxu0 %v2652_v10  ;;  %v1946_v10 = vand.u32 127, %v1680_v12 }
 0x6bf   : > { %2533 = vmatprep.subr.bf16.mxu0 %v2687_v1 }
 0x6c0   : > { %vm1947_vm6 = vcmp.lt.s32.totalorder %v1946_v10, 2 }
 0x6c2   : > { %2534 = vmatpush3.bf16.msra.mxu0 %v2653_v11 }
 0x6c3   : > { %2535 = vmatprep.subr.bf16.mxu0 %v2687_v1 }
 0x6c6   : > { %2536 = vmatpush3.bf16.msra.mxu0 %v2654_v63 }
 0x6c7   : > { %2537 = vmatprep.subr.bf16.mxu0 %v2687_v1  ;;  %v2151_v1 = vld [vmem:[%s3210_s5 + $0x7] ss:$0 sm:$0xff] }
 0x6ca   : > { %2538 = vmatpush3.bf16.msra.mxu0 %v2655_v0 }
 0x76d   : > { %v2501_v20 = vpop.f32.mrf.mxu0 }
 0x76e   : > { %v1663_v22 = vadd.f32 %v2501_v20, %v2132_v19 }
 0x76f   : > { %v1654_v23 = vpop.f32.mrf.mxu0 }
 0x770   : > { %v1655_v24 = vadd.f32 %v2132_v19, %v1654_v23  ;;  %v1671_v28 = vmax.f32 %v1663_v22, 0.0 }
 0x771   : > { %v2502_v25 = vpop.f32.mrf.mxu0 }
 0x772   : > { %v1666_v29 = vadd.f32 %v2502_v25, %v2132_v19  ;;  %v1669_v30 = vmax.f32 %v1655_v24, 0.0  ;;  %v1675_v33 = vmul.f32 %v2949_v40, %v1671_v28  ;;  %v2657_v40 = vpop.eup %2656 }
 0x773   : > { %v1657_v27 = vpop.f32.mrf.mxu0  ;;  %v2659_v54 = vpop.eup %2658 }
 0x774   : > { %v1672_v32 = vmax.f32 %v1666_v29, 0.0  ;;  %v1658_v31 = vadd.f32 %v2132_v19, %v1657_v27  ;;  %v1673_v36 = vmul.f32 %v2945_v38, %v1669_v30 }
 0x776   : > { %v1676_v34 = vmul.f32 %v2947_v39, %v1672_v32  ;;  %v1670_v35 = vmax.f32 %v1658_v31, 0.0 }
 0x778   : > { %v1678_v37 = vmax.f32 %v1675_v33, %v1676_v34  ;;  %v1674_v41 = vmul.f32 %v2951_v46, %v1670_v35 }
 0x77a   : > { %v1699_v42 = vrot.slane %v1678_v37, 4  ;;  %v1677_v43 = vmax.f32 %v1673_v36, %v1674_v41 }
 0x77c   : > { %v1700_v44 = vadd.f32 %v1699_v42, %v1678_v37  ;;  %v1693_v45 = vrot.slane %v1677_v43, 4 }
 0x77e   : > { %v1701_v47 = vrot.slane %v1700_v44, 2  ;;  %v1694_v48 = vadd.f32 %v1693_v45, %v1677_v43 }
 0x780   : > { %v1702_v49 = vadd.f32 %v1701_v47, %v1700_v44  ;;  %v1695_v50 = vrot.slane %v1694_v48, 2 }
 0x782   : > { %v1703_v51 = vrot.slane %v1702_v49, 1  ;;  %v1696_v52 = vadd.f32 %v1695_v50, %v1694_v48 }
 0x784   : > { %v1704_v53 = vadd.f32 %v1703_v51, %v1702_v49  ;;  %v1697_v39 = vrot.slane %v1696_v52, 1 }
 0x786   : > { %v1712_v55 = vmul.f32 %v2657_v40, %v1704_v53  ;;  %v1698_v56 = vadd.f32 %v1697_v39, %v1696_v52 }
 0x788   : > { %v1710_v38 = vmul.f32 %v2659_v54, %v1698_v56  ;;  %v1714_v57 = vpack.c.bf16 %v1712_v55, %v1712_v55 }
 0x78a   : > { %v1713_v58 = vpack.c.bf16 %v1710_v38, %v1710_v38  ;;  %v1739_v46 = vunpack.c.l.b16 %v1714_v57 }
 0x78c   : > { %v1738_v59 = vunpack.c.l.b16 %v1713_v58  ;;  %v1740_v60 = vrot.slane %v1739_v46, 7 }
 0x78e   : > { %v1742_v61 = vsel %vm1741_vm5, %v1740_v60, %v1738_v59 }
 0x78f   : > { %v1743_v62 = vpack.c.b16 %v1742_v61, %v1742_v61 }
 0x791   : > { %2520 = vmatmul.mubr.bf16.vlgmr.msra.gmra.mxu1 %v1743_v62 }
 0x851   : > { %v1827_v3 = vpop.f32.mrf.mxu1 }
 0x852   : > { %v1828_v4 = vadd.f32 %v2142_v2, %v1827_v3 }
 0x853   : > { %v2521_v5 = vpop.f32.mrf.mxu1 }
 0x854   : > { %v1833_v6 = vmax.f32 %v1828_v4, 0.0 }
 0x855   : > { %v1830_v7 = vpop.f32.mrf.mxu1 }
 0x856   : > { %v1834_v8 = vpack.c.bf16 %v1833_v6, %v1833_v6 }
 0x857   : > { %v2522_v9 = vpop.f32.mrf.mxu1 }
 0x858   : > { %2540 = vmatmul.mubr.bf16.vlgmr.msra.gmra.mxu0 %v1834_v8 }
 0x918   : > { %v1938_v11 = vpop.f32.mrf.mxu0 }
 0x919   : > { %v1939_v13 = vadd.f32 %v2151_v1, %v1938_v11 }
 0x91a   : > { %v2541_v14 = vpop.f32.mrf.mxu0 }
 0x91b   : > { %v1944_v15 = vmax.f32 %v1939_v13, 0.0 }
 0x91c   : > { %v1941_v16 = vpop.f32.mrf.mxu0 }
 0x91d   : > { %v1948_v17 = vsel %vm1947_vm6, %v1944_v15, -1e+30 }
 0x91e   : > { %v2542_v18 = vpop.f32.mrf.mxu0  ;;  %v1950_v19 = vsel %vm1949_vm7, %v1948_v17, -inf }
 0x91f   : > { %1951 = vmax.xlane.f32.xlu1 %v1950_v19 }
 0x9a8   : > { %v1952_v20 = vpop.xlane.xlu1 %1951 }
 0x9a9   : > { %v1953_v21 = vsub.f32 %v1948_v17, %v1952_v20 }
 0x9ab   : > { %v1954_v22 = vmul.f32 1.442695, %v1953_v21 }
 0x9ad   : > { %2660 = vpow2.f32 %v1954_v22 }
 0x9ba   : > { %v2661_v23 = vpop.eup %2660 }
 0x9bb   : > { %v1956_v24 = vsel %vm1949_vm7, %v2661_v23, 0.0 }
 0x9bc   : > { %1957 = vadd.xlane.f32.xlu1 %v1956_v24 }
 0xa45   : > { %v1958_v12 = vpop.xlane.xlu1 %1957 }
 0xa46   : > { %2662 = vlog2.f32 %v1958_v12 }
 0xa53   : > { %v2663_v25 = vpop.eup %2662 }
 0xa54   : > { %v1960_v26 = vmul.f32 0.6931472, %v2663_v25 }
 0xa56   : > { %v1961_v28 = vadd.f32 %v1960_v26, %v1952_v20 }
 0xa58   : > { %v1962_v29 = vsub.f32 %v1948_v17, %v1961_v28 }
 0xa5a   : > { %1963 = vst [vmem:[%s281_s15] sm:$0x3] %v1962_v29 }
 0xa5b PF: > { %s22_s26 = sadd.s32 1, %s2684_s26  }
 0xa5c   : > { %p19_p10 = scmp.ge.s32.totalorder %s22_s26, 4  }
 0xa5e   :  { %21 = sbr.rel (!%p19_p10) target bundleno = 16 (0x10), region = 76 }

</bundles_post_ra>
